<compile_context>
chip_gen: v7x
topology: tpu7x:2x2x1
jax: 0.10.0
libtpu: 0.0.40
codegen_flags: <defaults>
</compile_context>

<pallas_src>
import functools

import jax
import jax.numpy as jnp
from jax import lax
from jax.experimental import pallas as pl
from jax.experimental.pallas import tpu as pltpu


_NEG_INIT = -1.0e30  # finite "-inf" for the running max (avoids inf - inf = nan)


def _round_up(x, m):
    return ((x + m - 1) // m) * m


def _cdiv(a, b):
    return -(-a // b)


def _make_kernel(n_valid, tile_n, tiles_per_split, attn_d):
    """Kernel closure over static Python ints only (no captured jnp constants)."""
    f32 = jnp.float32
    bf16 = jnp.bfloat16
    neg_inf = float("-inf")  # Python float -> literal, not a captured constant

    def kernel(h_ref, w1_ref, b1_ref, wab_ref, bab_ref, wcT_ref, bc_ref,
               a_raw_ref, m_out_ref, l_out_ref, acc_out_ref,
               m_sc, l_sc, acc_sc):
        c = pl.program_id(0)   # split index (TensorCore on v7x)
        t = pl.program_id(1)   # tile index within the split

        # --- per-split init of the online-softmax state ---
        @pl.when(t == 0)
        def _():
            m_sc[...] = jnp.full_like(m_sc, _NEG_INIT)
            l_sc[...] = jnp.zeros_like(l_sc)
            acc_sc[...] = jnp.zeros_like(acc_sc)

        g = c * tiles_per_split + t                      # global tile index
        h_bf = h_ref[...].astype(bf16)                   # [tN, E] (cast in VMEM)

        # fc: Linear(E, H) + ReLU  (Dropout p=0 -> identity; inference path)
        h1 = jnp.dot(h_bf, w1_ref[...], preferred_element_type=f32) + b1_ref[...]
        h1 = jnp.maximum(h1, 0.0)                        # [tN, H] f32

        # Rows past the real bag (ragged / OOB tail reads) may contain garbage:
        # zero them so every downstream value stays finite (0-weight rows then
        # cannot inject NaN through 0 * inf in the accumulator matmul).
        row = g * tile_n + lax.broadcasted_iota(jnp.int32, (tile_n, 1), 0)
        h1 = jnp.where(row < n_valid, h1, 0.0)
        h1_bf = h1.astype(bf16)                          # f32 h1 dies here

        # Attn_Net_Gated: fused [wa || wb] matmul, split, tanh/sigmoid gates.
        ab = jnp.dot(h1_bf, wab_ref[...], preferred_element_type=f32) + bab_ref[...]
        a = jnp.tanh(ab[:, :attn_d])
        b = jax.nn.sigmoid(ab[:, attn_d:])
        gated = (a * b).astype(bf16)                     # [tN, D]

        # attention_c: [tN, D] @ [D, C] -> [tN, C], tiny XLU transpose -> [C, tN]
        s_nc = jnp.dot(gated, wcT_ref[...], preferred_element_type=f32) + bc_ref[...]
        A_cn = s_nc.T                                    # [C, tN]
        a_raw_ref[...] = A_cn                            # pre-softmax A_raw tile

        # Mask padded / OOB instance columns before the softmax update.
        col = g * tile_n + lax.broadcasted_iota(jnp.int32, A_cn.shape, 1)
        A_msk = jnp.where(col < n_valid, A_cn, neg_inf)

        # Online (flash-style) softmax over instances, carried across tiles.
        m_prev = m_sc[...]
        m_new = jnp.maximum(m_prev, jnp.max(A_msk, axis=1, keepdims=True))  # [C,1]
        alpha = jnp.exp(m_prev - m_new)
        p = jnp.exp(A_msk - m_new)                       # [C, tN] (0 on masked cols)
        l_sc[...] = alpha * l_sc[...] + jnp.sum(p, axis=1, keepdims=True)
        acc_sc[...] = alpha * acc_sc[...] + jnp.dot(
            p.astype(bf16), h1_bf, preferred_element_type=f32)             # [C, H]
        m_sc[...] = m_new

        # --- emit the per-split partial softmax state on the last tile ---
        @pl.when(t == pl.num_programs(1) - 1)
        def _():
            m_out_ref[...] = m_sc[...]
            l_out_ref[...] = l_sc[...]
            acc_out_ref[...] = acc_sc[...]

    return kernel


@functools.partial(jax.jit, static_argnames=("tile_n", "num_splits"))
def clam_mb_multilabel_forward(h, params, *, tile_n=2048, num_splits=2):
    """Fused forward. Returns (logits, Y_prob, Y_hat, A_raw, results)."""
    N, E = h.shape
    H = params["w1"].shape[1]
    D = params["wa"].shape[1]
    C = params["wc"].shape[0]
    f32 = jnp.float32
    bf16 = jnp.bfloat16

    # Tile sizing: multiple of 128 lanes, no larger than the (rounded) bag.
    tile_n = max(128, _round_up(int(tile_n), 128))
    tile_n = min(tile_n, _round_up(N, 128))
    num_tiles = _cdiv(N, tile_n)
    num_splits = max(1, min(int(num_splits), num_tiles))
    tps = _cdiv(num_tiles, num_splits)            # tiles per split
    padded_cols = num_splits * tps * tile_n       # A_raw output padding (cheap)
    last_tile = num_tiles - 1

    # Weights: bf16 for the MXU, biases in f32. wa/wb fused; wc pre-transposed.
    w1 = params["w1"].astype(bf16)                                     # [E, H]
    wab = jnp.concatenate([params["wa"], params["wb"]], axis=1).astype(bf16)  # [H, 2D]
    wcT = params["wc"].T.astype(bf16)                                  # [D, C]
    b1 = params["b1"].reshape(1, H).astype(f32)
    bab = jnp.concatenate([params["ba"], params["bb"]]).reshape(1, 2 * D).astype(f32)
    bc = params["bc"].reshape(1, C).astype(f32)

    kernel = _make_kernel(N, tile_n, tps, D)

    def h_index(c, t):
        # Clamp so a (rare) fully-out-of-range trailing tile re-reads the last
        # real block instead of issuing an OOB DMA; its columns are masked out.
        return (jnp.minimum(c * tps + t, last_tile), 0)

    def const2(shape):
        return pl.BlockSpec(shape, lambda c, t: (0, 0))

    cost = pl.CostEstimate(
        flops=2 * N * (E * H + H * 2 * D + D * C + C * H),
        transcendentals=N * (2 * D + 2 * C),
        bytes_accessed=(N * E * 4
                        + (E * H + H * 2 * D + D * C) * 2
                        + (H + 2 * D + C) * 4
                        + C * padded_cols * 4
                        + num_splits * C * (H + 2) * 4),
    )

    A_raw_pad, m_part, l_part, acc_part = pl.pallas_call(
        kernel,
        out_shape=(
            jax.ShapeDtypeStruct((C, padded_cols), f32),        # A_raw (pre-softmax)
            jax.ShapeDtypeStruct((num_splits, C, 1), f32),      # partial running max
            jax.ShapeDtypeStruct((num_splits, C, 1), f32),      # partial sum(exp)
            jax.ShapeDtypeStruct((num_splits, C, H), f32),      # partial accumulators
        ),
        grid_spec=pltpu.PrefetchScalarGridSpec(
            num_scalar_prefetch=0,
            grid=(num_splits, tps),
            in_specs=[
                pl.BlockSpec((tile_n, E), h_index),             # h: streamed per tile
                const2((E, H)), const2((1, H)),                 # w1, b1 (resident)
                const2((H, 2 * D)), const2((1, 2 * D)),         # [wa||wb], [ba||bb]
                const2((D, C)), const2((1, C)),                 # wc^T, bc
            ],
            out_specs=(
                pl.BlockSpec((C, tile_n), lambda c, t: (0, c * tps + t)),
                pl.BlockSpec((None, C, 1), lambda c, t: (c, 0, 0)),
                pl.BlockSpec((None, C, 1), lambda c, t: (c, 0, 0)),
                pl.BlockSpec((None, C, H), lambda c, t: (c, 0, 0)),
            ),
            scratch_shapes=[
                pltpu.VMEM((C, 1), f32),    # running max   (per core)
                pltpu.VMEM((C, 1), f32),    # running sum   (per core)
                pltpu.VMEM((C, H), f32),    # un-normalized bag features (per core)
            ],
        ),
        compiler_params=pltpu.CompilerParams(
            dimension_semantics=("parallel", "arbitrary"),  # splits across TCs; N carries
            vmem_limit_bytes=48 * 1024 * 1024,
        ),
        cost_estimate=cost,
    )(h, w1, b1, wab, bab, wcT, bc)

    A_raw = A_raw_pad[:, :N]

    # Merge per-split online-softmax states exactly (tiny [S, C, H] reduce).
    m_glob = jnp.max(m_part, axis=0)                    # [C, 1]
    w = jnp.exp(m_part - m_glob)                        # [S, C, 1]
    l_glob = jnp.sum(w * l_part, axis=0)                # [C, 1]
    M = jnp.sum(w * acc_part, axis=0) / l_glob          # [C, H]  (exact divide)

    # Per-class bag classifiers: logits[0, c] = M[c] . wcls[c] + bcls[c]
    logits = (jnp.sum(M * params["wcls"].astype(f32), axis=1)
              + params["bcls"].astype(f32)).reshape(1, C)
    Y_prob = jax.nn.sigmoid(logits)
    Y_hat = (Y_prob > 0.5).astype(jnp.int32)
    results = {"features": M}
    return logits, Y_prob, Y_hat, A_raw, results


def init_params(key, embed_dim, hidden, attn_dim, n_classes):
    """Deterministic synthetic parameter init (shapes mirror the PyTorch module)."""
    ks = jax.random.split(key, 10)
    f32 = jnp.float32
    s = 0.02
    return {
        # fc Linear(embed_dim, hidden)  -> stored [in, out]
        "w1":   (s * jax.random.normal(ks[0], (embed_dim, hidden))).astype(f32),
        "b1":   (s * jax.random.normal(ks[1], (hidden,))).astype(f32),
        # attention_a / attention_b Linear(hidden, attn_dim)
        "wa":   (s * jax.random.normal(ks[2], (hidden, attn_dim))).astype(f32),
        "ba":   (s * jax.random.normal(ks[3], (attn_dim,))).astype(f32),
        "wb":   (s * jax.random.normal(ks[4], (hidden, attn_dim))).astype(f32),
        "bb":   (s * jax.random.normal(ks[5], (attn_dim,))).astype(f32),
        # attention_c Linear(attn_dim, n_classes) -> PyTorch layout [C, D]
        "wc":   (s * jax.random.normal(ks[6], (n_classes, attn_dim))).astype(f32),
        "bc":   (s * jax.random.normal(ks[7], (n_classes,))).astype(f32),
        # per-class bag classifiers Linear(hidden, 1), stacked -> [C, hidden]
        "wcls": (s * jax.random.normal(ks[8], (n_classes, hidden))).astype(f32),
        "bcls": (s * jax.random.normal(ks[9], (n_classes,))).astype(f32),
    }


def _reference(h, params):
    """Pure-JAX f32 reference of the module's default forward path."""
    f32 = jnp.float32
    h = h.astype(f32)
    h1 = jnp.maximum(h @ params["w1"] + params["b1"], 0.0)
    a = jnp.tanh(h1 @ params["wa"] + params["ba"])
    b = jax.nn.sigmoid(h1 @ params["wb"] + params["bb"])
    A = (a * b) @ params["wc"].T + params["bc"]      # [N, C]
    A = A.T                                          # [C, N]
    A_soft = jax.nn.softmax(A, axis=1)
    M = A_soft @ h1
    logits = (jnp.sum(M * params["wcls"], axis=1) + params["bcls"]).reshape(1, -1)
    return logits, A, M


if __name__ == "__main__":
    # Small shapes consistent with the module (size_arg='small': [embed_dim, 512, 256]).
    N = 200           # bag size; not a tile multiple -> exercises ragged-tail masking
    EMBED_DIM = 256   # module default 1024; kept small for the demo
    HIDDEN = 512
    ATTN_D = 256
    N_CLASSES = 4
    TILE_N = 128      # small tile so the demo exercises the multi-tile / dual-split path

    key = jax.random.PRNGKey(0)
    k_h, k_p = jax.random.split(key)
    h = jax.random.normal(k_h, (N, EMBED_DIM), dtype=jnp.float32)
    params = init_params(k_p, EMBED_DIM, HIDDEN, ATTN_D, N_CLASSES)

    logits, Y_prob, Y_hat, A_raw, results = clam_mb_multilabel_forward(
        h, params, tile_n=TILE_N, num_splits=2)
    jax.block_until_ready((logits, Y_prob, Y_hat, A_raw, results["features"]))

    assert logits.shape == (1, N_CLASSES)
    assert Y_prob.shape == (1, N_CLASSES)
    assert Y_hat.shape == (1, N_CLASSES)
    assert A_raw.shape == (N_CLASSES, N)
    assert results["features"].shape == (N_CLASSES, HIDDEN)

    # Loose numerical check against the f32 reference (kernel uses bf16 matmuls).
    ref_logits, ref_A, ref_M = _reference(h, params)
    d_logits = float(jnp.max(jnp.abs(logits - ref_logits)))
    d_A = float(jnp.max(jnp.abs(A_raw - ref_A)))
    d_M = float(jnp.max(jnp.abs(results["features"] - ref_M)))
    assert bool(jnp.all(jnp.isfinite(logits))) and bool(jnp.all(jnp.isfinite(A_raw)))
    assert d_logits < 3e-2 and d_A < 3e-2 and d_M < 3e-2, (d_logits, d_A, d_M)

    print("KERNEL_OK")
</pallas_src>

<mosaic_0001>
module attributes {stable_mosaic.version = 11 : i64} {
  func.func @kernel(%arg0: i32, %arg1: i32, %arg2: memref<128x256xf32, #tpu.memory_space<vmem>>, %arg3: memref<256x512xbf16, #tpu.memory_space<vmem>>, %arg4: memref<1x512xf32, #tpu.memory_space<vmem>>, %arg5: memref<512x512xbf16, #tpu.memory_space<vmem>>, %arg6: memref<1x512xf32, #tpu.memory_space<vmem>>, %arg7: memref<256x4xbf16, #tpu.memory_space<vmem>>, %arg8: memref<1x4xf32, #tpu.memory_space<vmem>>, %arg9: memref<4x128xf32, #tpu.memory_space<vmem>>, %arg10: memref<1x4x1xf32, #tpu.memory_space<vmem>>, %arg11: memref<1x4x1xf32, #tpu.memory_space<vmem>>, %arg12: memref<1x4x512xf32, #tpu.memory_space<vmem>>, %arg13: memref<4x1xf32, #tpu.memory_space<vmem>>, %arg14: memref<4x1xf32, #tpu.memory_space<vmem>>, %arg15: memref<4x512xf32, #tpu.memory_space<vmem>>) attributes {dimension_semantics = [#tpu.dimension_semantics<parallel>, #tpu.dimension_semantics<arbitrary>], iteration_bounds = array<i64: 2, 1>, scalar_prefetch = 0 : i64, scratch_operands = 3 : i64, tpu.core_type = #tpu.core_type<tc>, window_params = [{transform_indices = @transform_0, window_bounds = array<i64: 128, 256>}, {pipeline_mode = #tpu.pipeline_mode<synchronous>, transform_indices = @transform_1, window_bounds = array<i64: 256, 512>}, {pipeline_mode = #tpu.pipeline_mode<synchronous>, transform_indices = @transform_2, window_bounds = array<i64: 1, 512>}, {pipeline_mode = #tpu.pipeline_mode<synchronous>, transform_indices = @transform_3, window_bounds = array<i64: 512, 512>}, {pipeline_mode = #tpu.pipeline_mode<synchronous>, transform_indices = @transform_4, window_bounds = array<i64: 1, 512>}, {pipeline_mode = #tpu.pipeline_mode<synchronous>, transform_indices = @transform_5, window_bounds = array<i64: 256, 4>}, {pipeline_mode = #tpu.pipeline_mode<synchronous>, transform_indices = @transform_6, window_bounds = array<i64: 1, 4>}, {transform_indices = @transform_7, window_bounds = array<i64: 4, 128>}, {transform_indices = @transform_8, window_bounds = array<i64: 1, 4, 1>}, {transform_indices = @transform_9, window_bounds = array<i64: 1, 4, 1>}, {transform_indices = @transform_10, window_bounds = array<i64: 1, 4, 512>}]} {
    %c0_i32 = arith.constant 0 : i32
    %0 = arith.cmpi eq, %arg1, %c0_i32 : i32
    %1 = arith.extui %0 : i1 to i32
    %c0_i32_0 = arith.constant 0 : i32
    %2 = arith.cmpi ne, %1, %c0_i32_0 : i32
    scf.if %2 {
      %cst_41 = arith.constant -1.000000e+30 : f32
      %81 = vector.broadcast %cst_41 : f32 to vector<4x1xf32>
      %c0_42 = arith.constant 0 : index
      %c0_43 = arith.constant 0 : index
      %82 = vector.load %arg13[%c0_42, %c0_43] : memref<4x1xf32, #tpu.memory_space<vmem>>, vector<4x1xf32>
      tpu.vector_store %arg13[%c0_42, %c0_43], %81 {strides = array<i32>} : memref<4x1xf32, #tpu.memory_space<vmem>>, vector<4x1xf32>,
      %cst_44 = arith.constant 0.000000e+00 : f32
      %83 = vector.broadcast %cst_44 : f32 to vector<4x1xf32>
      %c0_45 = arith.constant 0 : index
      %c0_46 = arith.constant 0 : index
      %84 = vector.load %arg14[%c0_45, %c0_46] : memref<4x1xf32, #tpu.memory_space<vmem>>, vector<4x1xf32>
      tpu.vector_store %arg14[%c0_45, %c0_46], %83 {strides = array<i32>} : memref<4x1xf32, #tpu.memory_space<vmem>>, vector<4x1xf32>,
      %cst_47 = arith.constant 0.000000e+00 : f32
      %85 = vector.broadcast %cst_47 : f32 to vector<4x512xf32>
      %c0_48 = arith.constant 0 : index
      %c0_49 = arith.constant 0 : index
      %86 = vector.load %arg15[%c0_48, %c0_49] : memref<4x512xf32, #tpu.memory_space<vmem>>, vector<4x512xf32>
      tpu.vector_store %arg15[%c0_48, %c0_49], %85 {strides = array<i32>} : memref<4x512xf32, #tpu.memory_space<vmem>>, vector<4x512xf32>,
    } else {
    }
    %c1_i32 = arith.constant 1 : i32
    %3 = arith.muli %arg0, %c1_i32 : i32
    %4 = arith.addi %3, %arg1 : i32
    %c0 = arith.constant 0 : index
    %c0_1 = arith.constant 0 : index
    %5 = vector.load %arg2[%c0, %c0_1] : memref<128x256xf32, #tpu.memory_space<vmem>>, vector<128x256xf32>
    %6 = arith.truncf %5 : vector<128x256xf32> to vector<128x256xbf16>
    %c0_2 = arith.constant 0 : index
    %c0_3 = arith.constant 0 : index
    %7 = vector.load %arg3[%c0_2, %c0_3] : memref<256x512xbf16, #tpu.memory_space<vmem>>, vector<256x512xbf16>
    %cst = arith.constant dense<0.000000e+00> : vector<128x512xf32>
    %8 = tpu.matmul %6, %7, %cst {dimension_numbers = #tpu.dot_dimension_numbers<[1], [0], [0], [1], [0, 0, 1, 1], [], []>} : vector<128x256xbf16>, vector<256x512xbf16>, vector<128x512xf32> -> vector<128x512xf32>
    %c0_4 = arith.constant 0 : index
    %c0_5 = arith.constant 0 : index
    %9 = vector.load %arg4[%c0_4, %c0_5] : memref<1x512xf32, #tpu.memory_space<vmem>>, vector<1x512xf32>
    %10 = vector.broadcast %9 : vector<1x512xf32> to vector<128x512xf32>
    %11 = arith.addf %8, %10 : vector<128x512xf32>
    %cst_6 = arith.constant 0.000000e+00 : f32
    %12 = vector.broadcast %cst_6 : f32 to vector<128x512xf32>
    %13 = arith.maximumf %11, %12 : vector<128x512xf32>
    %c128_i32 = arith.constant 128 : i32
    %14 = arith.muli %4, %c128_i32 : i32
    %15 = tpu.iota {dimensions = array<i32: 0>} : vector<128x1xi32>
    %16 = vector.broadcast %14 : i32 to vector<128x1xi32>
    %17 = arith.addi %16, %15 : vector<128x1xi32>
    %c200_i32 = arith.constant 200 : i32
    %18 = vector.broadcast %c200_i32 : i32 to vector<128x1xi32>
    %19 = arith.cmpi slt, %17, %18 : vector<128x1xi32>
    %cst_7 = arith.constant 0.000000e+00 : f32
    %20 = vector.shape_cast %19 : vector<128x1xi1> to vector<128x1xi1>
    %21 = vector.broadcast %20 : vector<128x1xi1> to vector<128x512xi1>
    %22 = vector.broadcast %cst_7 : f32 to vector<128x512xf32>
    %23 = arith.select %21, %13, %22 : vector<128x512xi1>, vector<128x512xf32>
    %24 = arith.truncf %23 : vector<128x512xf32> to vector<128x512xbf16>
    %c0_8 = arith.constant 0 : index
    %c0_9 = arith.constant 0 : index
    %25 = vector.load %arg5[%c0_8, %c0_9] : memref<512x512xbf16, #tpu.memory_space<vmem>>, vector<512x512xbf16>
    %cst_10 = arith.constant dense<0.000000e+00> : vector<128x512xf32>
    %26 = tpu.matmul %24, %25, %cst_10 {dimension_numbers = #tpu.dot_dimension_numbers<[1], [0], [0], [1], [0, 0, 1, 1], [], []>} : vector<128x512xbf16>, vector<512x512xbf16>, vector<128x512xf32> -> vector<128x512xf32>
    %c0_11 = arith.constant 0 : index
    %c0_12 = arith.constant 0 : index
    %27 = vector.load %arg6[%c0_11, %c0_12] : memref<1x512xf32, #tpu.memory_space<vmem>>, vector<1x512xf32>
    %28 = vector.broadcast %27 : vector<1x512xf32> to vector<128x512xf32>
    %29 = arith.addf %26, %28 : vector<128x512xf32>
    %30 = vector.extract_strided_slice %29 {offsets = [0, 0], sizes = [128, 256], strides = [1, 1]} : vector<128x512xf32> to vector<128x256xf32>
    %31 = math.tanh %30 : vector<128x256xf32>
    %32 = vector.extract_strided_slice %29 {offsets = [0, 256], sizes = [128, 256], strides = [1, 1]} : vector<128x512xf32> to vector<128x256xf32>
    %33 = arith.negf %32 : vector<128x256xf32>
    %34 = math.exp %33 : vector<128x256xf32>
    %cst_13 = arith.constant 1.000000e+00 : f32
    %35 = vector.broadcast %cst_13 : f32 to vector<128x256xf32>
    %36 = arith.addf %35, %34 : vector<128x256xf32>
    %37 = arith.divf %35, %36 : vector<128x256xf32>
    %38 = arith.mulf %31, %37 : vector<128x256xf32>
    %39 = arith.truncf %38 : vector<128x256xf32> to vector<128x256xbf16>
    %c0_14 = arith.constant 0 : index
    %c0_15 = arith.constant 0 : index
    %40 = vector.load %arg7[%c0_14, %c0_15] : memref<256x4xbf16, #tpu.memory_space<vmem>>, vector<256x4xbf16>
    %cst_16 = arith.constant dense<0.000000e+00> : vector<128x4xf32>
    %41 = tpu.matmul %39, %40, %cst_16 {dimension_numbers = #tpu.dot_dimension_numbers<[1], [0], [0], [1], [0, 0, 1, 1], [], []>} : vector<128x256xbf16>, vector<256x4xbf16>, vector<128x4xf32> -> vector<128x4xf32>
    %c0_17 = arith.constant 0 : index
    %c0_18 = arith.constant 0 : index
    %42 = vector.load %arg8[%c0_17, %c0_18] : memref<1x4xf32, #tpu.memory_space<vmem>>, vector<1x4xf32>
    %43 = vector.broadcast %42 : vector<1x4xf32> to vector<128x4xf32>
    %44 = arith.addf %41, %43 : vector<128x4xf32>
    %45 = tpu.transpose %44, [1, 0] : vector<128x4xf32> -> vector<4x128xf32>
    %c0_19 = arith.constant 0 : index
    %c0_20 = arith.constant 0 : index
    %46 = vector.load %arg9[%c0_19, %c0_20] : memref<4x128xf32, #tpu.memory_space<vmem>>, vector<4x128xf32>
    tpu.vector_store %arg9[%c0_19, %c0_20], %45 {strides = array<i32>} : memref<4x128xf32, #tpu.memory_space<vmem>>, vector<4x128xf32>,
    %c128_i32_21 = arith.constant 128 : i32
    %47 = arith.muli %4, %c128_i32_21 : i32
    %48 = tpu.iota {dimensions = array<i32: 1>} : vector<4x128xi32>
    %49 = vector.broadcast %47 : i32 to vector<4x128xi32>
    %50 = arith.addi %49, %48 : vector<4x128xi32>
    %c200_i32_22 = arith.constant 200 : i32
    %51 = vector.broadcast %c200_i32_22 : i32 to vector<4x128xi32>
    %52 = arith.cmpi slt, %50, %51 : vector<4x128xi32>
    %cst_23 = arith.constant 0xFF800000 : f32
    %53 = vector.broadcast %cst_23 : f32 to vector<4x128xf32>
    %54 = arith.select %52, %45, %53 : vector<4x128xi1>, vector<4x128xf32>
    %c0_24 = arith.constant 0 : index
    %c0_25 = arith.constant 0 : index
    %55 = vector.load %arg13[%c0_24, %c0_25] : memref<4x1xf32, #tpu.memory_space<vmem>>, vector<4x1xf32>
    %cst_26 = arith.constant dense<0xFF800000> : vector<4xf32>
    %56 = vector.multi_reduction <maximumf>, %54, %cst_26 [1] : vector<4x128xf32> to vector<4xf32>
    %57 = vector.shape_cast %56 : vector<4xf32> to vector<4x1xf32>
    %58 = arith.maximumf %55, %57 : vector<4x1xf32>
    %59 = arith.subf %55, %58 : vector<4x1xf32>
    %60 = math.exp %59 : vector<4x1xf32>
    %61 = vector.broadcast %58 : vector<4x1xf32> to vector<4x128xf32>
    %62 = arith.subf %54, %61 : vector<4x128xf32>
    %63 = math.exp %62 : vector<4x128xf32>
    %c0_27 = arith.constant 0 : index
    %c0_28 = arith.constant 0 : index
    %64 = vector.load %arg14[%c0_27, %c0_28] : memref<4x1xf32, #tpu.memory_space<vmem>>, vector<4x1xf32>
    %65 = arith.mulf %60, %64 : vector<4x1xf32>
    %cst_29 = arith.constant dense<0.000000e+00> : vector<4xf32>
    %66 = vector.multi_reduction <add>, %63, %cst_29 [1] : vector<4x128xf32> to vector<4xf32>
    %67 = vector.shape_cast %66 : vector<4xf32> to vector<4x1xf32>
    %68 = arith.addf %65, %67 : vector<4x1xf32>
    %c0_30 = arith.constant 0 : index
    %c0_31 = arith.constant 0 : index
    %69 = vector.load %arg14[%c0_30, %c0_31] : memref<4x1xf32, #tpu.memory_space<vmem>>, vector<4x1xf32>
    tpu.vector_store %arg14[%c0_30, %c0_31], %68 {strides = array<i32>} : memref<4x1xf32, #tpu.memory_space<vmem>>, vector<4x1xf32>,
    %c0_32 = arith.constant 0 : index
    %c0_33 = arith.constant 0 : index
    %70 = vector.load %arg15[%c0_32, %c0_33] : memref<4x512xf32, #tpu.memory_space<vmem>>, vector<4x512xf32>
    %71 = vector.broadcast %60 : vector<4x1xf32> to vector<4x512xf32>
    %72 = arith.mulf %71, %70 : vector<4x512xf32>
    %73 = arith.truncf %63 : vector<4x128xf32> to vector<4x128xbf16>
    %cst_34 = arith.constant dense<0.000000e+00> : vector<4x512xf32>
    %74 = tpu.matmul %73, %24, %cst_34 {dimension_numbers = #tpu.dot_dimension_numbers<[1], [0], [0], [1], [0, 0, 1, 1], [], []>} : vector<4x128xbf16>, vector<128x512xbf16>, vector<4x512xf32> -> vector<4x512xf32>
    %75 = arith.addf %72, %74 : vector<4x512xf32>
    %c0_35 = arith.constant 0 : index
    %c0_36 = arith.constant 0 : index
    %76 = vector.load %arg15[%c0_35, %c0_36] : memref<4x512xf32, #tpu.memory_space<vmem>>, vector<4x512xf32>
    tpu.vector_store %arg15[%c0_35, %c0_36], %75 {strides = array<i32>} : memref<4x512xf32, #tpu.memory_space<vmem>>, vector<4x512xf32>,
    %c0_37 = arith.constant 0 : index
    %c0_38 = arith.constant 0 : index
    %77 = vector.load %arg13[%c0_37, %c0_38] : memref<4x1xf32, #tpu.memory_space<vmem>>, vector<4x1xf32>
    tpu.vector_store %arg13[%c0_37, %c0_38], %58 {strides = array<i32>} : memref<4x1xf32, #tpu.memory_space<vmem>>, vector<4x1xf32>,
    %c0_i32_39 = arith.constant 0 : i32
    %78 = arith.cmpi eq, %arg1, %c0_i32_39 : i32
    %79 = arith.extui %78 : i1 to i32
    %c0_i32_40 = arith.constant 0 : i32
    %80 = arith.cmpi ne, %79, %c0_i32_40 : i32
    scf.if %80 {
      %c0_41 = arith.constant 0 : index
      %c0_42 = arith.constant 0 : index
      %81 = vector.load %arg13[%c0_41, %c0_42] : memref<4x1xf32, #tpu.memory_space<vmem>>, vector<4x1xf32>
      %c0_43 = arith.constant 0 : index
      %c0_44 = arith.constant 0 : index
      %c0_45 = arith.constant 0 : index
      %82 = vector.load %arg10[%c0_43, %c0_44, %c0_45] : memref<1x4x1xf32, #tpu.memory_space<vmem>>, vector<1x4x1xf32>
      %83 = vector.shape_cast %82 : vector<1x4x1xf32> to vector<4x1xf32>
      %84 = vector.shape_cast %81 : vector<4x1xf32> to vector<1x4x1xf32>
      tpu.vector_store %arg10[%c0_43, %c0_44, %c0_45], %84 {strides = array<i32>} : memref<1x4x1xf32, #tpu.memory_space<vmem>>, vector<1x4x1xf32>,
      %c0_46 = arith.constant 0 : index
      %c0_47 = arith.constant 0 : index
      %85 = vector.load %arg14[%c0_46, %c0_47] : memref<4x1xf32, #tpu.memory_space<vmem>>, vector<4x1xf32>
      %c0_48 = arith.constant 0 : index
      %c0_49 = arith.constant 0 : index
      %c0_50 = arith.constant 0 : index
      %86 = vector.load %arg11[%c0_48, %c0_49, %c0_50] : memref<1x4x1xf32, #tpu.memory_space<vmem>>, vector<1x4x1xf32>
      %87 = vector.shape_cast %86 : vector<1x4x1xf32> to vector<4x1xf32>
      %88 = vector.shape_cast %85 : vector<4x1xf32> to vector<1x4x1xf32>
      tpu.vector_store %arg11[%c0_48, %c0_49, %c0_50], %88 {strides = array<i32>} : memref<1x4x1xf32, #tpu.memory_space<vmem>>, vector<1x4x1xf32>,
      %c0_51 = arith.constant 0 : index
      %c0_52 = arith.constant 0 : index
      %89 = vector.load %arg15[%c0_51, %c0_52] : memref<4x512xf32, #tpu.memory_space<vmem>>, vector<4x512xf32>
      %c0_53 = arith.constant 0 : index
      %c0_54 = arith.constant 0 : index
      %c0_55 = arith.constant 0 : index
      %90 = vector.load %arg12[%c0_53, %c0_54, %c0_55] : memref<1x4x512xf32, #tpu.memory_space<vmem>>, vector<1x4x512xf32>
      %91 = vector.shape_cast %90 : vector<1x4x512xf32> to vector<4x512xf32>
      %92 = vector.shape_cast %89 : vector<4x512xf32> to vector<1x4x512xf32>
      tpu.vector_store %arg12[%c0_53, %c0_54, %c0_55], %92 {strides = array<i32>} : memref<1x4x512xf32, #tpu.memory_space<vmem>>, vector<1x4x512xf32>,
    } else {
    }
    return
  }
  func.func @transform_0(%arg0: i32, %arg1: i32) -> (i32, i32) {
    %c1_i32 = arith.constant 1 : i32
    %0 = arith.muli %arg0, %c1_i32 : i32
    %1 = arith.addi %0, %arg1 : i32
    %c1_i32_0 = arith.constant 1 : i32
    %2 = arith.minsi %1, %c1_i32_0 : i32
    %c0_i32 = arith.constant 0 : i32
    %c0_i32_1 = arith.constant 0 : i32
    return %2, %c0_i32 : i32, i32
  }
  func.func @transform_1(%arg0: i32, %arg1: i32) -> (i32, i32) {
    %c0_i32 = arith.constant 0 : i32
    %c0_i32_0 = arith.constant 0 : i32
    %c0_i32_1 = arith.constant 0 : i32
    return %c0_i32, %c0_i32_0 : i32, i32
  }
  func.func @transform_2(%arg0: i32, %arg1: i32) -> (i32, i32) {
    %c0_i32 = arith.constant 0 : i32
    %c0_i32_0 = arith.constant 0 : i32
    %c0_i32_1 = arith.constant 0 : i32
    return %c0_i32, %c0_i32_0 : i32, i32
  }
  func.func @transform_3(%arg0: i32, %arg1: i32) -> (i32, i32) {
    %c0_i32 = arith.constant 0 : i32
    %c0_i32_0 = arith.constant 0 : i32
    %c0_i32_1 = arith.constant 0 : i32
    return %c0_i32, %c0_i32_0 : i32, i32
  }
  func.func @transform_4(%arg0: i32, %arg1: i32) -> (i32, i32) {
    %c0_i32 = arith.constant 0 : i32
    %c0_i32_0 = arith.constant 0 : i32
    %c0_i32_1 = arith.constant 0 : i32
    return %c0_i32, %c0_i32_0 : i32, i32
  }
  func.func @transform_5(%arg0: i32, %arg1: i32) -> (i32, i32) {
    %c0_i32 = arith.constant 0 : i32
    %c0_i32_0 = arith.constant 0 : i32
    %c0_i32_1 = arith.constant 0 : i32
    return %c0_i32, %c0_i32_0 : i32, i32
  }
  func.func @transform_6(%arg0: i32, %arg1: i32) -> (i32, i32) {
    %c0_i32 = arith.constant 0 : i32
    %c0_i32_0 = arith.constant 0 : i32
    %c0_i32_1 = arith.constant 0 : i32
    return %c0_i32, %c0_i32_0 : i32, i32
  }
  func.func @transform_7(%arg0: i32, %arg1: i32) -> (i32, i32) {
    %c1_i32 = arith.constant 1 : i32
    %0 = arith.muli %arg0, %c1_i32 : i32
    %1 = arith.addi %0, %arg1 : i32
    %c0_i32 = arith.constant 0 : i32
    %c0_i32_0 = arith.constant 0 : i32
    return %c0_i32, %1 : i32, i32
  }
  func.func @transform_8(%arg0: i32, %arg1: i32) -> (i32, i32, i32) {
    %c0_i32 = arith.constant 0 : i32
    %c0_i32_0 = arith.constant 0 : i32
    %c0_i32_1 = arith.constant 0 : i32
    return %arg0, %c0_i32, %c0_i32_0 : i32, i32, i32
  }
  func.func @transform_9(%arg0: i32, %arg1: i32) -> (i32, i32, i32) {
    %c0_i32 = arith.constant 0 : i32
    %c0_i32_0 = arith.constant 0 : i32
    %c0_i32_1 = arith.constant 0 : i32
    return %arg0, %c0_i32, %c0_i32_0 : i32, i32, i32
  }
  func.func @transform_10(%arg0: i32, %arg1: i32) -> (i32, i32, i32) {
    %c0_i32 = arith.constant 0 : i32
    %c0_i32_0 = arith.constant 0 : i32
    %c0_i32_1 = arith.constant 0 : i32
    return %arg0, %c0_i32, %c0_i32_0 : i32, i32, i32
  }
}

</mosaic_0001>

<bundles_post_ra>
// kernel: clam_mb_multilabel_forward.1
= control target key start
LH: loop header
LB: loop body
LE: loop exit
PB: predicated region body
PF: predicated region fallthrough
CT: control target
= control target key end

     0   :  { %16 = vsyncpa [#allocation6], 0  ;;  %s6530_s0 = inlined_call_operand.vmem [shape: f32[200,256], index: 0, kind: input, shape index: {}]   ;;  %s6531_s1 = inlined_call_operand.vmem [shape: bf16[256,512], index: 1, kind: input, shape index: {}]   ;;  %s6532_s2 = inlined_call_operand.vmem [shape: f32[1,512], index: 2, kind: input, shape index: {}]   ;;  %s6533_s3 = inlined_call_operand.vmem [shape: bf16[512,512], index: 3, kind: input, shape index: {}]   ;;  %s6534_s4 = inlined_call_operand.vmem [shape: f32[1,512], index: 4, kind: input, shape index: {}]   ;;  %s6535_s5 = inlined_call_operand.vmem [shape: bf16[256,4], index: 5, kind: input, shape index: {}]   ;;  %s6536_s6 = inlined_call_operand.vmem [shape: f32[1,4], index: 6, kind: input, shape index: {}]   ;;  %s6537_s7 = inlined_call_operand.hbm [shape: f32[4,256], index: 7, kind: output, shape index: {0}]   ;;  %s6538_s8 = inlined_call_operand.vmem [shape: f32[2,4,1], index: 8, kind: output, shape index: {1}]   ;;  %s6539_s9 = inlined_call_operand.vmem [shape: f32[2,4,1], index: 9, kind: output, shape index: {2}]   ;;  %s6540_s10 = inlined_call_operand.vmem [shape: f32[2,4,512], index: 10, kind: output, shape index: {3}]  }
   0x1   :  { %18 = vsyncpa [#allocation6 + $0x1], 0  ;;  %s4944_s13 = smov 0   ;;  %s4946_s14 = smov 0  }
   0x2   :  { %s4948_s15 = smov 0   ;;  %s4950_s16 = smov 0  }
   0x3   :  { %s4952_s17 = smov 0   ;;  %s4954_s18 = smov 0  }
   0x4 LB: > { %6557 = sst [smem:[#allocation8_spill]] %s4871_s15  ;;  %s3504_s19 = sadd.s32 4294967295, %s4883_s18   ;;  %s4883_s18 = sphi %s4954_s18, %s24_s18   ;;  %s4879_s17 = sphi %s4952_s17, %s6600_s17   ;;  %s4875_s16 = sphi %s4950_s16, %s6599_s16   ;;  %s4871_s15 = sphi %s4948_s15, %s6598_s15   ;;  %s4867_s14 = sphi %s4946_s14, %s6602_s14   ;;  %s4863_s13 = sphi %s4944_s13, %s6601_s13  }
   0x5   : > { %6558 = sst [smem:[#allocation9_spill]] %s4879_s17  ;;  %s3505_s20 = sadd.s32 4294967294, %s4883_s18  }
   0x6   : > { %s36_s21 = sadd.s32 1, %s4879_s17  ;;  %s203_s22 = sadd.s32 1, %s4871_s15 }
   0x7   : > { %p38_p0 = scmp.ge.s32.totalorder %s36_s21, 2  ;;  %p213_p1 = scmp.ne.s32.totalorder %s4871_s15, %s4867_s14 }
   0x8   : > { %p214_p2 = scmp.eq.s32.totalorder %s3504_s19, 1  ;;  %p219_p3 = scmp.ne.s32.totalorder %s4867_s14, %s4863_s13 }
   0x9   : > { %s6604_s21 = smov (%p38_p0, %s36_s21), 0  ;;  %p220_p5 = scmp.eq.s32.totalorder %s3505_s20, 1 }
   0xa   : > { %6559 = sst [smem:[#allocation10_spill]] %s6604_s21  ;;  %p4984_p4 = por %p214_p2, %p213_p1 }
   0xb   : > { %s200_s24 = ssub.s32 %s4879_s17, %s6604_s21  ;;  %p3508_p6 = scmp.ge.s32.totalorder %s4883_s18, 1 }
   0xc   : > { %p201_p7 = scmp.eq.s32.totalorder %s200_s24, 0  ;;  %p4991_p8 = por %p220_p5, %p219_p3 }
   0xd   : > { %p360_p9 = scmp.lt.s32.totalorder %s4883_s18, 3 }
   0xe   : > { %s4997_s26 = scalar_select %p201_p7, %s4871_s15, %s203_s22  }
   0xf   : > { %p361_p10 = pnand %p3508_p6, %p360_p9 }
  0x10   : > { %6562 = sst [smem:[#allocation11_spill]] %s4997_s26 }
  0x11   : > { %364 = sbr.rel (%p361_p10) target bundleno = 1542 (0x606), region = 48 }
  0x18   : > { %v4305_v0 = vld [vmem:[%s6531_s1 + $0x4] ss:$16 sps:$4 sm:$0xff]   ;;  %p421_p11 = scmp.lt.s32.totalorder %s4875_s16, 1  ;;  %v4307_v1 = vld [vmem:[%s6531_s1] ss:$16 sps:$4 sm:$0xff]   ;;  %s3581_s15 = sshll.u32 %s4875_s16, 7 }
  0x19   : > { %922 = vmatprep.subr.bf16.mxu0 %v4305_v0  ;;  %v4308_v2 = vld [vmem:[%s6531_s1 + $0x24] ss:$16 sps:$4 sm:$0xff]   ;;  %v4310_v3 = vld [vmem:[%s6531_s1 + $0x20] ss:$16 sps:$4 sm:$0xff]   ;;  %v4353_v13 = vld [vmem:[%s6531_s1 + $0xc] ss:$16 sps:$4 sm:$0xff]  }
  0x1a   : > { %s5010_s19 = scalar_select %p421_p11, %s4875_s16, 1  ;;  %923 = vmatpush1.bf16.msra.mxu0 %v4307_v1  ;;  %v4311_v4 = vld [vmem:[%s6531_s1 + $0x44] ss:$16 sps:$4 sm:$0xff]   ;;  %v4313_v5 = vld [vmem:[%s6531_s1 + $0x40] ss:$16 sps:$4 sm:$0xff]   ;;  %1035 = vmatprep.subr.bf16.mxu1 %v4353_v13 }
  0x1b   : > { %924 = vmatprep.subr.bf16.mxu0 %v4308_v2  ;;  %v4314_v6 = vld [vmem:[%s6531_s1 + $0x64] ss:$16 sps:$4 sm:$0xff]   ;;  %v4316_v7 = vld [vmem:[%s6531_s1 + $0x60] ss:$16 sps:$4 sm:$0xff]   ;;  %v4355_v14 = vld [vmem:[%s6531_s1 + $0x8] ss:$16 sps:$4 sm:$0xff]  }
  0x1c   : > { %s5019_s28 = sshll.u32 %s5010_s19, 4  ;;  %v4317_v8 = vld [vmem:[%s6531_s1 + $0x84] ss:$16 sps:$4 sm:$0xff]   ;;  %v4319_v9 = vld [vmem:[%s6531_s1 + $0x80] ss:$16 sps:$4 sm:$0xff]   ;;  %1036 = vmatpush1.bf16.msra.mxu1 %v4355_v14  ;;  %s398_s20 = sand.u32 1, %s4867_s14  }
  0x1d   : > { %p429_p12 = scmp.lt.s32.totalorder %s5019_s28, 24  ;;  %v4320_v10 = vld [vmem:[%s6531_s1 + $0xa4] ss:$16 sps:$4 sm:$0xff]   ;;  %v4322_v11 = vld [vmem:[%s6531_s1 + $0xa0] ss:$16 sps:$4 sm:$0xff]   ;;  %s6407_s22 = sshll.u32 %s398_s20, 2 }
  0x1e   : > { %925 = vmatpush1.bf16.msra.mxu0 %v4310_v3  ;;  %v4323_v12 = vld [vmem:[%s6531_s1 + $0xc4] ss:$16 sps:$4 sm:$0xff]   ;;  %v4325_v16 = vld [vmem:[%s6531_s1 + $0xc0] ss:$16 sps:$4 sm:$0xff]   ;;  %v4356_v20 = vld [vmem:[%s6531_s1 + $0x2c] ss:$16 sps:$4 sm:$0xff]  }
  0x1f   : > { %926 = vmatprep.subr.bf16.mxu0 %v4311_v4  ;;  %s430_s21 = scalar_select %p429_p12, %s5019_s28, 24  ;;  %v4326_v17 = vld [vmem:[%s6531_s1 + $0xe4] ss:$16 sps:$4 sm:$0xff]   ;;  %v4358_v21 = vld [vmem:[%s6531_s1 + $0x28] ss:$16 sps:$4 sm:$0xff]   ;;  %1037 = vmatprep.subr.bf16.mxu1 %v4356_v20 }
  0x20   : > { %v4359_v22 = vld [vmem:[%s6531_s1 + $0x4c] ss:$16 sps:$4 sm:$0xff]   ;;  %v4328_v23 = vld [vmem:[%s6531_s1 + $0xe0] ss:$16 sps:$4 sm:$0xff]   ;;  %v4329_v24 = vld [vmem:[%s6531_s1 + $0x104] ss:$16 sps:$4 sm:$0xff]   ;;  %1038 = vmatpush1.bf16.msra.mxu1 %v4358_v21 }
  0x21   : > { %s4051_s17 = sshll.u32 %s430_s21, 4  ;;  %v4361_v25 = vld [vmem:[%s6531_s1 + $0x48] ss:$16 sps:$4 sm:$0xff]   ;;  %1039 = vmatprep.subr.bf16.mxu1 %v4359_v22  ;;  %v4362_v26 = vld [vmem:[%s6531_s1 + $0x6c] ss:$16 sps:$4 sm:$0xff]   ;;  %s400_s24 = scalar_lea.vmem [#allocation5], %s6407_s22 }
  0x22   : > { %927 = vmatpush1.bf16.msra.mxu0 %v4313_v5  ;;  %s5047_s27 = scalar_lea.vmem %s6530_s0, %s4051_s17  ;;  %v4331_v27 = vld [vmem:[%s6531_s1 + $0x100] ss:$16 sps:$4 sm:$0xff]   ;;  %v4332_v28 = vld [vmem:[%s6531_s1 + $0x124] ss:$16 sps:$4 sm:$0xff]   ;;  %v4364_v29 = vld [vmem:[%s6531_s1 + $0x68] ss:$16 sps:$4 sm:$0xff]  }
  0x23   : > { %928 = vmatprep.subr.bf16.mxu0 %v4314_v6  ;;  %v469_v15 = vld [vmem:[%s5047_s27 + $0x8] sm:$0xff]  ;;  %v471_v18 = vld [vmem:[%s5047_s27 + $0x18] sm:$0xff]  ;;  %v4334_v31 = vld [vmem:[%s6531_s1 + $0x120] ss:$16 sps:$4 sm:$0xff]   ;;  %s3354_s11 = sshll.u32 %s400_s24, 4  ;;  %s4048_s12 = sshll.u32 %s4875_s16, 6  ;;  %s6471_s11 = int_to_ptr.vmem [resolvable:$true] %s3354_s11 }
  0x24   : > { %v501_v19 = vpack.c.bf16 %v471_v18, %v469_v15  ;;  %1040 = vmatpush1.bf16.msra.mxu1 %v4361_v25  ;;  %v4365_v30 = vld [vmem:[%s6531_s1 + $0x8c] ss:$16 sps:$4 sm:$0xff]   ;;  %v4335_v32 = vld [vmem:[%s6531_s1 + $0x144] ss:$16 sps:$4 sm:$0xff]   ;;  %v4367_v33 = vld [vmem:[%s6531_s1 + $0x88] ss:$16 sps:$4 sm:$0xff]   ;;  %s3352_s17 = scalar_lea.hbm %s6537_s7, %s4048_s12 }
  0x25   : > { %1041 = vmatprep.subr.bf16.mxu1 %v4362_v26  ;;  %v4368_v34 = vld [vmem:[%s6531_s1 + $0xac] ss:$16 sps:$4 sm:$0xff]   ;;  %v4337_v35 = vld [vmem:[%s6531_s1 + $0x140] ss:$16 sps:$4 sm:$0xff]   ;;  %v4338_v36 = vld [vmem:[%s6531_s1 + $0x164] ss:$16 sps:$4 sm:$0xff]  }
  0x26   : > { %929 = vmatpush1.bf16.msra.mxu0 %v4316_v7  ;;  %954 = vmatprep.mubr.bf16.mxu0 %v501_v19  ;;  %v4370_v37 = vld [vmem:[%s6531_s1 + $0xa8] ss:$16 sps:$4 sm:$0xff]   ;;  %v4371_v38 = vld [vmem:[%s6531_s1 + $0xcc] ss:$16 sps:$4 sm:$0xff]   ;;  %v4340_v39 = vld [vmem:[%s6531_s1 + $0x160] ss:$16 sps:$4 sm:$0xff]  }
  0x27   : > { %930 = vmatprep.subr.bf16.mxu0 %v4317_v8  ;;  %1067 = vmatprep.mubr.bf16.mxu1 %v501_v19  ;;  %v4341_v40 = vld [vmem:[%s6531_s1 + $0x184] ss:$16 sps:$4 sm:$0xff]   ;;  %v4373_v41 = vld [vmem:[%s6531_s1 + $0xc8] ss:$16 sps:$4 sm:$0xff]   ;;  %v4374_v42 = vld [vmem:[%s6531_s1 + $0xec] ss:$16 sps:$4 sm:$0xff]  }
  0x28   : > { %1042 = vmatpush1.bf16.msra.mxu1 %v4364_v29  ;;  %v4343_v43 = vld [vmem:[%s6531_s1 + $0x180] ss:$16 sps:$4 sm:$0xff]   ;;  %v4344_v44 = vld [vmem:[%s6531_s1 + $0x1a4] ss:$16 sps:$4 sm:$0xff]   ;;  %v4376_v45 = vld [vmem:[%s6531_s1 + $0xe8] ss:$16 sps:$4 sm:$0xff]  }
  0x29   : > { %1043 = vmatprep.subr.bf16.mxu1 %v4365_v30  ;;  %v4377_v46 = vld [vmem:[%s6531_s1 + $0x10c] ss:$16 sps:$4 sm:$0xff]   ;;  %v4346_v47 = vld [vmem:[%s6531_s1 + $0x1a0] ss:$16 sps:$4 sm:$0xff]   ;;  %v4347_v48 = vld [vmem:[%s6531_s1 + $0x1c4] ss:$16 sps:$4 sm:$0xff]  }
  0x2a   : > { %931 = vmatpush1.bf16.msra.mxu0 %v4319_v9  ;;  %v4379_v49 = vld [vmem:[%s6531_s1 + $0x108] ss:$16 sps:$4 sm:$0xff]   ;;  %v4380_v50 = vld [vmem:[%s6531_s1 + $0x12c] ss:$16 sps:$4 sm:$0xff]   ;;  %v4349_v51 = vld [vmem:[%s6531_s1 + $0x1c0] ss:$16 sps:$4 sm:$0xff]  }
  0x2b   : > { %932 = vmatprep.subr.bf16.mxu0 %v4320_v10  ;;  %v4350_v52 = vld [vmem:[%s6531_s1 + $0x1e4] ss:$16 sps:$4 sm:$0xff]   ;;  %v4352_v53 = vld [vmem:[%s6531_s1 + $0x1e0] ss:$16 sps:$4 sm:$0xff]   ;;  %v4382_v55 = vld [vmem:[%s6531_s1 + $0x128] ss:$16 sps:$4 sm:$0xff]  }
  0x2c   : > { %1044 = vmatpush1.bf16.msra.mxu1 %v4367_v33  ;;  %v468_v54 = vld [vmem:[%s5047_s27] sm:$0xff]  ;;  %v470_v56 = vld [vmem:[%s5047_s27 + $0x10] sm:$0xff]  ;;  %v4383_v57 = vld [vmem:[%s6531_s1 + $0x14c] ss:$16 sps:$4 sm:$0xff]   ;;  %s3327_s29 = scalar_lea.sflag [#allocation6], %s398_s20 }
  0x2d   : > { %1045 = vmatprep.subr.bf16.mxu1 %v4368_v34  ;;  %v473_v58 = vld [vmem:[%s5047_s27 + $0x28] sm:$0xff]  ;;  %v475_v59 = vld [vmem:[%s5047_s27 + $0x38] sm:$0xff]  ;;  %v4406_v60 = vld [vmem:[%s6533_s3 + $0x4] ss:$16 sps:$4 sm:$0xff]   ;;  %v5184_v62 = vpack.c.bf16 %v470_v56, %v468_v54 }
  0x2e   : > { %933 = vmatpush1.bf16.msra.mxu0 %v4322_v11  ;;  %v4385_v61 = vld [vmem:[%s6531_s1 + $0x148] ss:$16 sps:$4 sm:$0xff]   ;;  %v4386_v63 = vld [vmem:[%s6531_s1 + $0x16c] ss:$16 sps:$4 sm:$0xff]   ;;  %v5189_v0 = vpack.c.bf16 %v475_v59, %v473_v58  ;;  %v4404_v1 = vld [vmem:[%s6533_s3] ss:$16 sps:$4 sm:$0xff]  }
  0x2f   : > { %934 = vmatprep.subr.bf16.mxu0 %v4323_v12  ;;  %v4412_v2 = vld [vmem:[%s6533_s3 + $0x24] ss:$16 sps:$4 sm:$0xff]   ;;  %v4388_v5 = vld [vmem:[%s6531_s1 + $0x168] ss:$16 sps:$4 sm:$0xff]   ;;  %v4389_v7 = vld [vmem:[%s6531_s1 + $0x18c] ss:$16 sps:$4 sm:$0xff]  }
  0x30   : > { %1046 = vmatpush1.bf16.msra.mxu1 %v4370_v37  ;;  %v472_v3 = vld [vmem:[%s5047_s27 + $0x20] sm:$0xff]  ;;  %v474_v4 = vld [vmem:[%s5047_s27 + $0x30] sm:$0xff]  ;;  %v477_v6 = vld [vmem:[%s5047_s27 + $0x48] sm:$0xff] }
  0x31   : > { %1047 = vmatprep.subr.bf16.mxu1 %v4371_v38  ;;  %v479_v8 = vld [vmem:[%s5047_s27 + $0x58] sm:$0xff]  ;;  %v4410_v9 = vld [vmem:[%s6533_s3 + $0x20] ss:$16 sps:$4 sm:$0xff]   ;;  %v4418_v10 = vld [vmem:[%s6533_s3 + $0x44] ss:$16 sps:$4 sm:$0xff]   ;;  %v5218_v12 = vpack.c.bf16 %v474_v4, %v472_v3 }
  0x32   : > { %935 = vmatpush1.bf16.msra.mxu0 %v4325_v16  ;;  %v4391_v11 = vld [vmem:[%s6531_s1 + $0x188] ss:$16 sps:$4 sm:$0xff]   ;;  %v4392_v13 = vld [vmem:[%s6531_s1 + $0x1ac] ss:$16 sps:$4 sm:$0xff]   ;;  %v5223_v14 = vpack.c.bf16 %v479_v8, %v477_v6  ;;  %v4416_v15 = vld [vmem:[%s6533_s3 + $0x40] ss:$16 sps:$4 sm:$0xff]  }
  0x33   : > { %936 = vmatprep.subr.bf16.mxu0 %v4326_v17  ;;  %v4424_v16 = vld [vmem:[%s6533_s3 + $0x64] ss:$16 sps:$4 sm:$0xff]   ;;  %v4394_v19 = vld [vmem:[%s6531_s1 + $0x1a8] ss:$16 sps:$4 sm:$0xff]   ;;  %v4395_v21 = vld [vmem:[%s6531_s1 + $0x1cc] ss:$16 sps:$4 sm:$0xff]  }
  0x34   : > { %1048 = vmatpush1.bf16.msra.mxu1 %v4373_v41  ;;  %v476_v17 = vld [vmem:[%s5047_s27 + $0x40] sm:$0xff]  ;;  %v478_v18 = vld [vmem:[%s5047_s27 + $0x50] sm:$0xff]  ;;  %v481_v20 = vld [vmem:[%s5047_s27 + $0x68] sm:$0xff] }
  0x35   : > { %1049 = vmatprep.subr.bf16.mxu1 %v4374_v42  ;;  %v483_v22 = vld [vmem:[%s5047_s27 + $0x78] sm:$0xff]  ;;  %v5252_v26 = vpack.c.bf16 %v478_v18, %v476_v17  ;;  %v4428_v29 = vld [vmem:[%s6533_s3 + $0x80] ss:$16 sps:$4 sm:$0xff]   ;;  %v4436_v30 = vld [vmem:[%s6533_s3 + $0xa4] ss:$16 sps:$4 sm:$0xff]  }
  0x36   : > { %937 = vmatpush1.bf16.msra.mxu0 %v4328_v23  ;;  %v4422_v23 = vld [vmem:[%s6533_s3 + $0x60] ss:$16 sps:$4 sm:$0xff]   ;;  %v4397_v25 = vld [vmem:[%s6531_s1 + $0x1c8] ss:$16 sps:$4 sm:$0xff]   ;;  %v4442_v38 = vld [vmem:[%s6533_s3 + $0xc4] ss:$16 sps:$4 sm:$0xff]  }
  0x37   : > { %938 = vmatprep.subr.bf16.mxu0 %v4329_v24  ;;  %v4430_v24 = vld [vmem:[%s6533_s3 + $0x84] ss:$16 sps:$4 sm:$0xff]   ;;  %v4400_v33 = vld [vmem:[%s6531_s1 + $0x1e8] ss:$16 sps:$4 sm:$0xff]   ;;  %v4434_v37 = vld [vmem:[%s6533_s3 + $0xa0] ss:$16 sps:$4 sm:$0xff]  }
  0x38   : > { %1050 = vmatpush1.bf16.msra.mxu1 %v4376_v45  ;;  %v485_v34 = vld [vmem:[%s5047_s27 + $0x88] sm:$0xff]  ;;  %v484_v45 = vld [vmem:[%s5047_s27 + $0x80] sm:$0xff] }
  0x39   : > { %1051 = vmatprep.subr.bf16.mxu1 %v4377_v46  ;;  %v4409_v41 = vld [vmem:[%s6533_s3 + $0x2c] ss:$16 sps:$4 sm:$0xff]   ;;  %v486_v46 = vld [vmem:[%s5047_s27 + $0x90] sm:$0xff]  ;;  %v4419_v59 = vld [vmem:[%s6533_s3 + $0x68] ss:$16 sps:$4 sm:$0xff]  }
  0x3a   : > { %939 = vmatpush1.bf16.msra.mxu0 %v4331_v27  ;;  %v4398_v27 = vld [vmem:[%s6531_s1 + $0x1ec] ss:$16 sps:$4 sm:$0xff]   ;;  %v5328_v56 = vpack.c.bf16 %v486_v46, %v484_v45  ;;  %v4425_v3 = vld [vmem:[%s6533_s3 + $0x88] ss:$16 sps:$4 sm:$0xff]   ;;  %v4496_v46 = vld [vmem:[%s6533_s3 + $0x1e4] ss:$16 sps:$4 sm:$0xff]  }
  0x3b   : > { %940 = vmatprep.subr.bf16.mxu0 %v4332_v28  ;;  %v5257_v28 = vpack.c.bf16 %v483_v22, %v481_v20  ;;  %v4421_v54 = vld [vmem:[%s6533_s3 + $0x6c] ss:$16 sps:$4 sm:$0xff]   ;;  %v4437_v17 = vld [vmem:[%s6533_s3 + $0xc8] ss:$16 sps:$4 sm:$0xff]  }
  0x3c   : > { %1052 = vmatpush1.bf16.msra.mxu1 %v4379_v49  ;;  %v491_v49 = vld [vmem:[%s5047_s27 + $0xb8] sm:$0xff] }
  0x3d   : > { %1053 = vmatprep.subr.bf16.mxu1 %v4380_v50  ;;  %v4415_v50 = vld [vmem:[%s6533_s3 + $0x4c] ss:$16 sps:$4 sm:$0xff]   ;;  %v4491_v45 = vld [vmem:[%s6533_s3 + $0x1e8] ss:$16 sps:$4 sm:$0xff]  }
  0x3e   : > { %941 = vmatpush1.bf16.msra.mxu0 %v4334_v31  ;;  %v480_v31 = vld [vmem:[%s5047_s27 + $0x60] sm:$0xff]  ;;  %v4433_v4 = vld [vmem:[%s6533_s3 + $0xac] ss:$16 sps:$4 sm:$0xff]  }
  0x3f   : > { %942 = vmatprep.subr.bf16.mxu0 %v4335_v32  ;;  %v482_v32 = vld [vmem:[%s5047_s27 + $0x70] sm:$0xff]  ;;  %v4445_v18 = vld [vmem:[%s6533_s3 + $0xec] ss:$16 sps:$4 sm:$0xff]  }
  0x40   : > { %1054 = vmatpush1.bf16.msra.mxu1 %v4382_v55  ;;  %v4452_v55 = vld [vmem:[%s6533_s3 + $0x100] ss:$16 sps:$4 sm:$0xff]  }
  0x41   : > { %1055 = vmatprep.subr.bf16.mxu1 %v4383_v57  ;;  %v4460_v57 = vld [vmem:[%s6533_s3 + $0x124] ss:$16 sps:$4 sm:$0xff]  }
  0x42   : > { %943 = vmatpush1.bf16.msra.mxu0 %v4337_v35  ;;  %v4403_v35 = vld [vmem:[%s6533_s3 + $0xc] ss:$16 sps:$4 sm:$0xff]  }
  0x43   : > { %944 = vmatprep.subr.bf16.mxu0 %v4338_v36  ;;  %v487_v36 = vld [vmem:[%s5047_s27 + $0x98] sm:$0xff] }
  0x44   : > { %1056 = vmatpush1.bf16.msra.mxu1 %v4385_v61  ;;  %v5291_v42 = vpack.c.bf16 %v487_v36, %v485_v34  ;;  %v488_v61 = vld [vmem:[%s5047_s27 + $0xa0] sm:$0xff]  ;;  %v4469_v34 = vld [vmem:[%s6533_s3 + $0x16c] ss:$16 sps:$4 sm:$0xff]  }
  0x45   : > { %1057 = vmatprep.subr.bf16.mxu1 %v4386_v63  ;;  %v4458_v63 = vld [vmem:[%s6533_s3 + $0x120] ss:$16 sps:$4 sm:$0xff]   ;;  %v4475_v36 = vld [vmem:[%s6533_s3 + $0x18c] ss:$16 sps:$4 sm:$0xff]  }
  0x46   : > { %945 = vmatpush1.bf16.msra.mxu0 %v4340_v39  ;;  %v4401_v39 = vld [vmem:[%s6533_s3 + $0x8] ss:$16 sps:$4 sm:$0xff]  }
  0x47   : > { %946 = vmatprep.subr.bf16.mxu0 %v4341_v40  ;;  %v5286_v40 = vpack.c.bf16 %v482_v32, %v480_v31  ;;  %v4455_v31 = vld [vmem:[%s6533_s3 + $0x128] ss:$16 sps:$4 sm:$0xff]   ;;  %v4463_v32 = vld [vmem:[%s6533_s3 + $0x14c] ss:$16 sps:$4 sm:$0xff]  }
  0x48   : > { %1058 = vmatpush1.bf16.msra.mxu1 %v4388_v5  ;;  %v4464_v5 = vld [vmem:[%s6533_s3 + $0x140] ss:$16 sps:$4 sm:$0xff]  }
  0x49   : > { %1059 = vmatprep.subr.bf16.mxu1 %v4389_v7  ;;  %v4472_v7 = vld [vmem:[%s6533_s3 + $0x164] ss:$16 sps:$4 sm:$0xff]  }
  0x4a   : > { %947 = vmatpush1.bf16.msra.mxu0 %v4343_v43  ;;  %v4440_v43 = vld [vmem:[%s6533_s3 + $0xc0] ss:$16 sps:$4 sm:$0xff]  }
  0x4b   : > { %948 = vmatprep.subr.bf16.mxu0 %v4344_v44  ;;  %v4448_v44 = vld [vmem:[%s6533_s3 + $0xe4] ss:$16 sps:$4 sm:$0xff]  }
  0x4c   : > { %1060 = vmatpush1.bf16.msra.mxu1 %v4391_v11  ;;  %v492_v11 = vld [vmem:[%s5047_s27 + $0xc0] sm:$0xff] }
  0x4d   : > { %1061 = vmatprep.subr.bf16.mxu1 %v4392_v13  ;;  %v4470_v13 = vld [vmem:[%s6533_s3 + $0x160] ss:$16 sps:$4 sm:$0xff]  }
  0x4e   : > { %949 = vmatpush1.bf16.msra.mxu0 %v4346_v47  ;;  %v4407_v47 = vld [vmem:[%s6533_s3 + $0x28] ss:$16 sps:$4 sm:$0xff]  }
  0x4f   : > { %950 = vmatprep.subr.bf16.mxu0 %v4347_v48  ;;  %v489_v48 = vld [vmem:[%s5047_s27 + $0xa8] sm:$0xff] }
  0x50   : > { %1062 = vmatpush1.bf16.msra.mxu1 %v4394_v19  ;;  %v5333_v58 = vpack.c.bf16 %v491_v49, %v489_v48  ;;  %v4476_v19 = vld [vmem:[%s6533_s3 + $0x180] ss:$16 sps:$4 sm:$0xff]   ;;  %v4499_v48 = vld [vmem:[%s6533_s3 + $0x20c] ss:$16 sps:$4 sm:$0xff]   ;;  %v4502_v49 = vld [vmem:[%s6533_s3 + $0x204] ss:$16 sps:$4 sm:$0xff]  }
  0x51   : > { %1063 = vmatprep.subr.bf16.mxu1 %v4395_v21  ;;  %v4484_v21 = vld [vmem:[%s6533_s3 + $0x1a4] ss:$16 sps:$4 sm:$0xff]  }
  0x52   : > { %951 = vmatpush1.bf16.msra.mxu0 %v4349_v51  ;;  %v4446_v51 = vld [vmem:[%s6533_s3 + $0xe0] ss:$16 sps:$4 sm:$0xff]  }
  0x53   : > { %952 = vmatprep.subr.bf16.mxu0 %v4350_v52  ;;  %v4454_v52 = vld [vmem:[%s6533_s3 + $0x104] ss:$16 sps:$4 sm:$0xff]  }
  0x54   : > { %1064 = vmatpush1.bf16.msra.mxu1 %v4397_v25  ;;  %v496_v25 = vld [vmem:[%s5047_s27 + $0xe0] sm:$0xff] }
  0x55   : > { %1065 = vmatprep.subr.bf16.mxu1 %v4398_v27  ;;  %v4482_v27 = vld [vmem:[%s6533_s3 + $0x1a0] ss:$16 sps:$4 sm:$0xff]  }
  0x56   : > { %953 = vmatpush1.bf16.msra.mxu0 %v4352_v53  ;;  %v4413_v53 = vld [vmem:[%s6533_s3 + $0x48] ss:$16 sps:$4 sm:$0xff]  }
  0x57   : > { %2181 = vmatprep.subr.bf16.mxu0 %v4406_v60  ;;  %v4427_v60 = vld [vmem:[%s6533_s3 + $0x8c] ss:$16 sps:$4 sm:$0xff]  }
  0x58   : > { %1066 = vmatpush1.bf16.msra.mxu1 %v4400_v33  ;;  %v4461_v33 = vld [vmem:[%s6533_s3 + $0x148] ss:$16 sps:$4 sm:$0xff]  }
  0x59   : > { %955 = vmatmul.mubr.bf16.vlgmr.msra.gmra.mrb[0].mxu0 %v5184_v62  ;;  %2407 = vmatprep.subr.bf16.mxu1 %v4403_v35  ;;  %v4467_v35 = vld [vmem:[%s6533_s3 + $0x168] ss:$16 sps:$4 sm:$0xff]  }
  0x5a   : > { %964 = vmatprep.mubr.bf16.mxu0 %v5189_v0  ;;  %2182 = vmatpush1.bf16.msra.mxu0 %v4404_v1  ;;  %v495_v1 = vld [vmem:[%s5047_s27 + $0xd8] sm:$0xff] }
  0x5b   : > { %2183 = vmatprep.subr.bf16.mxu0 %v4412_v2  ;;  %1068 = vmatmul.mubr.bf16.vlgmr.msra.gmra.mrb[0].mxu1 %v5184_v62  ;;  %v490_v62 = vld [vmem:[%s5047_s27 + $0xb0] sm:$0xff] }
  0x5c   : > { %1077 = vmatprep.mubr.bf16.mxu1 %v5189_v0  ;;  %2408 = vmatpush1.bf16.msra.mxu1 %v4401_v39  ;;  %v493_v0 = vld [vmem:[%s5047_s27 + $0xc8] sm:$0xff]  ;;  %v4466_v2 = vld [vmem:[%s6533_s3 + $0x144] ss:$16 sps:$4 sm:$0xff]   ;;  %v510_v6 = vpack.c.bf16 %v490_v62, %v488_v61 }
  0x5d   : > { %2409 = vmatprep.subr.bf16.mxu1 %v4409_v41  ;;  %v513_v8 = vpack.c.bf16 %v495_v1, %v493_v0  ;;  %v4479_v39 = vld [vmem:[%s6533_s3 + $0x1a8] ss:$16 sps:$4 sm:$0xff]  }
  0x5e   : > { %2184 = vmatpush1.bf16.msra.mxu0 %v4410_v9  ;;  %v4431_v9 = vld [vmem:[%s6533_s3 + $0xa8] ss:$16 sps:$4 sm:$0xff]  }
  0x5f   : > { %2185 = vmatprep.subr.bf16.mxu0 %v4418_v10  ;;  %v4439_v10 = vld [vmem:[%s6533_s3 + $0xcc] ss:$16 sps:$4 sm:$0xff]   ;;  %v4485_v41 = vld [vmem:[%s6533_s3 + $0x1c8] ss:$16 sps:$4 sm:$0xff]  }
  0x60   : > { %2410 = vmatpush1.bf16.msra.mxu1 %v4407_v47  ;;  %v4494_v47 = vld [vmem:[%s6533_s3 + $0x1e0] ss:$16 sps:$4 sm:$0xff]  }
  0x61   : > { %965 = vmatmul.mubr.bf16.gmra.mrb[4].mxu0 %v5218_v12  ;;  %2411 = vmatprep.subr.bf16.mxu1 %v4415_v50  ;;  %v6544_v50 = vlaneseq }
  0x62   : > { %974 = vmatprep.mubr.bf16.mxu0 %v5223_v14  ;;  %2186 = vmatpush1.bf16.msra.mxu0 %v4416_v15  ;;  %v499_v15 = vld [vmem:[%s5047_s27 + $0xf8] sm:$0xff] }
  0x63   : > { %2187 = vmatprep.subr.bf16.mxu0 %v4424_v16  ;;  %1078 = vmatmul.mubr.bf16.gmra.mrb[4].mxu1 %v5218_v12  ;;  %v494_v12 = vld [vmem:[%s5047_s27 + $0xd0] sm:$0xff] }
  0x64   : > { %1087 = vmatprep.mubr.bf16.mxu1 %v5223_v14  ;;  %2412 = vmatpush1.bf16.msra.mxu1 %v4413_v53  ;;  %v497_v14 = vld [vmem:[%s5047_s27 + $0xe8] sm:$0xff]  ;;  %v4478_v16 = vld [vmem:[%s6533_s3 + $0x184] ss:$16 sps:$4 sm:$0xff]   ;;  %v512_v20 = vpack.c.bf16 %v494_v12, %v492_v11  ;;  %v5483_v53 = vld [vmem:[%s6532_s2] sm:$0xf] }
  0x65   : > { %2413 = vmatprep.subr.bf16.mxu1 %v4421_v54  ;;  %v515_v22 = vpack.c.bf16 %v499_v15, %v497_v14  ;;  %v4497_v15 = vld [vmem:[%s6533_s3 + $0x208] ss:$16 sps:$4 sm:$0xff]  }
  0x66   : > { %2188 = vmatpush1.bf16.msra.mxu0 %v4422_v23  ;;  %v4443_v23 = vld [vmem:[%s6533_s3 + $0xe8] ss:$16 sps:$4 sm:$0xff]  }
  0x67   : > { %2189 = vmatprep.subr.bf16.mxu0 %v4430_v24  ;;  %v4451_v24 = vld [vmem:[%s6533_s3 + $0x10c] ss:$16 sps:$4 sm:$0xff]  }
  0x68   : > { %2414 = vmatpush1.bf16.msra.mxu1 %v4419_v59 }
  0x69   : > { %975 = vmatmul.mubr.bf16.gmra.mrb[8].mxu0 %v5252_v26  ;;  %2415 = vmatprep.subr.bf16.mxu1 %v4427_v60 }
  0x6a   : > { %984 = vmatprep.mubr.bf16.mxu0 %v5257_v28  ;;  %2190 = vmatpush1.bf16.msra.mxu0 %v4428_v29  ;;  %v4457_v29 = vld [vmem:[%s6533_s3 + $0x12c] ss:$16 sps:$4 sm:$0xff]  }
  0x6b   : > { %2191 = vmatprep.subr.bf16.mxu0 %v4436_v30  ;;  %1088 = vmatmul.mubr.bf16.gmra.mrb[8].mxu1 %v5252_v26  ;;  %v498_v26 = vld [vmem:[%s5047_s27 + $0xf0] sm:$0xff]  ;;  %s6556_s27 = sshll.u32 %s5010_s19, 2 }
  0x6c   : > { %1097 = vmatprep.mubr.bf16.mxu1 %v5257_v28  ;;  %2416 = vmatpush1.bf16.msra.mxu1 %v4425_v3  ;;  %v4449_v28 = vld [vmem:[%s6533_s3 + $0x108] ss:$16 sps:$4 sm:$0xff]   ;;  %v514_v30 = vpack.c.bf16 %v498_v26, %v496_v25  ;;  %s447_s30 = scalar_lea.vmem %s6538_s8, %s6556_s27 }
  0x6d   : > { %2417 = vmatprep.subr.bf16.mxu1 %v4433_v4 }
  0x6e   : > { %2192 = vmatpush1.bf16.msra.mxu0 %v4434_v37  ;;  %v4473_v37 = vld [vmem:[%s6533_s3 + $0x188] ss:$16 sps:$4 sm:$0xff]  }
  0x6f   : > { %2193 = vmatprep.subr.bf16.mxu0 %v4442_v38  ;;  %v4481_v38 = vld [vmem:[%s6533_s3 + $0x1ac] ss:$16 sps:$4 sm:$0xff]  }
  0x70   : > { %2418 = vmatpush1.bf16.msra.mxu1 %v4431_v9 }
  0x71   : > { %985 = vmatmul.mubr.bf16.gmra.mrb[12].mxu0 %v5286_v40  ;;  %2419 = vmatprep.subr.bf16.mxu1 %v4439_v10 }
  0x72   : > { %994 = vmatprep.mubr.bf16.mxu0 %v5291_v42  ;;  %2194 = vmatpush1.bf16.msra.mxu0 %v4440_v43  ;;  %v4488_v43 = vld [vmem:[%s6533_s3 + $0x1c0] ss:$16 sps:$4 sm:$0xff]  }
  0x73   : > { %2195 = vmatprep.subr.bf16.mxu0 %v4448_v44  ;;  %1098 = vmatmul.mubr.bf16.gmra.mrb[12].mxu1 %v5286_v40  ;;  %v4487_v40 = vld [vmem:[%s6533_s3 + $0x1cc] ss:$16 sps:$4 sm:$0xff]  }
  0x74   : > { %1107 = vmatprep.mubr.bf16.mxu1 %v5291_v42  ;;  %2420 = vmatpush1.bf16.msra.mxu1 %v4437_v17  ;;  %v4490_v42 = vld [vmem:[%s6533_s3 + $0x1c4] ss:$16 sps:$4 sm:$0xff]   ;;  %v4493_v44 = vld [vmem:[%s6533_s3 + $0x1ec] ss:$16 sps:$4 sm:$0xff]  }
  0x75   : > { %2421 = vmatprep.subr.bf16.mxu1 %v4445_v18 }
  0x76   : > { %2196 = vmatpush1.bf16.msra.mxu0 %v4446_v51  ;;  %v5476_v51 = vshrl.u32 %v6544_v50, 7 }
  0x77   : > { %2197 = vmatprep.subr.bf16.mxu0 %v4454_v52 }
  0x78   : > { %2422 = vmatpush1.bf16.msra.mxu1 %v4443_v23  ;;  %v584_v52 = vsub.s32 0, %v5476_v51  ;;  %v588_v54 = vsub.s32 1, %v5476_v51 }
  0x79   : > { %995 = vmatmul.mubr.bf16.gmra.mrb[16].mxu0 %v5328_v56  ;;  %2423 = vmatprep.subr.bf16.mxu1 %v4451_v24 }
  0x7a   : > { %1004 = vmatprep.mubr.bf16.mxu0 %v5333_v58  ;;  %2198 = vmatpush1.bf16.msra.mxu0 %v4452_v55  ;;  %v1215_v55 = vadd.s32 8, %v5476_v51 }
  0x7b   : > { %2199 = vmatprep.subr.bf16.mxu0 %v4460_v57  ;;  %1108 = vmatmul.mubr.bf16.gmra.mrb[16].mxu1 %v5328_v56  ;;  %v5487_v56 = vstv %s3581_s15  ;;  %v5492_v57 = vrot.slane %v5483_v53, %v584_v52  ;;  %s4805_s15 = scalar_lea.vmem %s6471_s11, 64 }
  0x7c   : > { %1117 = vmatprep.mubr.bf16.mxu1 %v5333_v58  ;;  %2424 = vmatpush1.bf16.msra.mxu1 %v4449_v28  ;;  %v5497_v58 = vrot.slane %v5483_v53, %v588_v54  ;;  %v1231_v59 = vadd.s32 %v5487_v56, %v5476_v51  ;;  %v1232_v61 = vadd.s32 %v5487_v56, %v1215_v55  ;;  %v1218_v28 = vadd.s32 32, %v5476_v51  ;;  %v4517_v55 = vld [vmem:[%s6533_s3 + $0x26c] ss:$16 sps:$4 sm:$0xff]   ;;  %p4806_p13 = scmp.ne.s32.totalorder %s6471_s11, %s4805_s15 }
  0x7d   : > { %2425 = vmatprep.subr.bf16.mxu1 %v4457_v29 }
  0x7e   : > { %2200 = vmatpush1.bf16.msra.mxu0 %v4458_v63  ;;  %vm1247_vm0 = vcmp.lt.s32.totalorder %v1231_v59, 200  ;;  %vm1248_vm1 = vcmp.lt.s32.totalorder %v1232_v61, 200  ;;  %v4520_v59 = vld [vmem:[%s6533_s3 + $0x264] ss:$16 sps:$4 sm:$0xff]   ;;  %p4807_p0 = pnand %p4806_p13, %p4984_p4 }
  0x7f   : > { %2201 = vmatprep.subr.bf16.mxu0 %v4466_v2  ;;  %vm5510_vm2 = vmpackc.low %vm1248_vm1, %vm1247_vm0 }
  0x80   : > { %2426 = vmatpush1.bf16.msra.mxu1 %v4455_v31  ;;  %v1219_v31 = vadd.s32 40, %v5476_v51  ;;  %p4808_p1 = pneg %p4807_p0 }
  0x81   : > { %1005 = vmatmul.mubr.bf16.gmra.mrb[20].mxu0 %v510_v6  ;;  %2427 = vmatprep.subr.bf16.mxu1 %v4463_v32 }
  0x82   : > { %1014 = vmatprep.mubr.bf16.mxu0 %v513_v8  ;;  %2202 = vmatpush1.bf16.msra.mxu0 %v4464_v5  ;;  %v1216_v5 = vadd.s32 16, %v5476_v51 }
  0x83   : > { %2203 = vmatprep.subr.bf16.mxu0 %v4472_v7  ;;  %1118 = vmatmul.mubr.bf16.gmra.mrb[20].mxu1 %v510_v6  ;;  %v1217_v6 = vadd.s32 24, %v5476_v51 }
  0x84   : > { %1127 = vmatprep.mubr.bf16.mxu1 %v513_v8  ;;  %2428 = vmatpush1.bf16.msra.mxu1 %v4461_v33  ;;  %v1233_v17 = vadd.s32 %v5487_v56, %v1216_v5  ;;  %v1221_v5 = vadd.s32 56, %v5476_v51 }
  0x85   : > { %2429 = vmatprep.subr.bf16.mxu1 %v4469_v34  ;;  %v1234_v18 = vadd.s32 %v5487_v56, %v1217_v6  ;;  %v4511_v34 = vld [vmem:[%s6533_s3 + $0x24c] ss:$16 sps:$4 sm:$0xff]  }
  0x86   : > { %2204 = vmatpush1.bf16.msra.mxu0 %v4470_v13  ;;  %vm1249_vm3 = vcmp.lt.s32.totalorder %v1233_v17, 200 }
  0x87   : > { %2205 = vmatprep.subr.bf16.mxu0 %v4478_v16  ;;  %v4500_v16 = vld [vmem:[%s6533_s3 + $0x200] ss:$16 sps:$4 sm:$0xff]   ;;  %vm1250_vm4 = vcmp.lt.s32.totalorder %v1234_v18, 200  ;;  %v4521_v18 = vld [vmem:[%s6533_s3 + $0x288] ss:$16 sps:$4 sm:$0xff]  }
  0x88   : > { %2430 = vmatpush1.bf16.msra.mxu1 %v4467_v35  ;;  %v4514_v35 = vld [vmem:[%s6533_s3 + $0x244] ss:$16 sps:$4 sm:$0xff]   ;;  %vm5562_vm5 = vmpackc.low %vm1250_vm4, %vm1249_vm3 }
  0x89   : > { %1015 = vmatmul.mubr.bf16.gmra.mrb[24].mxu0 %v512_v20  ;;  %2431 = vmatprep.subr.bf16.mxu1 %v4475_v36 }
  0x8a   : > { %1024 = vmatprep.mubr.bf16.mxu0 %v515_v22  ;;  %2206 = vmatpush1.bf16.msra.mxu0 %v4476_v19 }
  0x8b   : > { %2207 = vmatprep.subr.bf16.mxu0 %v4484_v21  ;;  %1128 = vmatmul.mubr.bf16.gmra.mrb[24].mxu1 %v512_v20  ;;  %v4505_v21 = vld [vmem:[%s6533_s3 + $0x22c] ss:$16 sps:$4 sm:$0xff]  }
  0x8c   : > { %1137 = vmatprep.mubr.bf16.mxu1 %v515_v22  ;;  %2432 = vmatpush1.bf16.msra.mxu1 %v4473_v37  ;;  %v4508_v22 = vld [vmem:[%s6533_s3 + $0x224] ss:$16 sps:$4 sm:$0xff]  }
  0x8d   : > { %2433 = vmatprep.subr.bf16.mxu1 %v4481_v38 }
  0x8e   : > { %2208 = vmatpush1.bf16.msra.mxu0 %v4482_v27  ;;  %v4503_v27 = vld [vmem:[%s6533_s3 + $0x228] ss:$16 sps:$4 sm:$0xff]  }
  0x8f   : > { %2209 = vmatprep.subr.bf16.mxu0 %v4490_v42 }
  0x90   : > { %2434 = vmatpush1.bf16.msra.mxu1 %v4479_v39 }
  0x91   : > { %1025 = vmatmul.mubr.bf16.gmra.mrb[28].mxu0 %v514_v30  ;;  %2435 = vmatprep.subr.bf16.mxu1 %v4487_v40  ;;  %v1235_v40 = vadd.s32 %v5487_v56, %v1218_v28 }
  0x92   : > { %2210 = vmatpush1.bf16.msra.mxu0 %v4488_v43 }
  0x93   : > { %1138 = vmatmul.mubr.bf16.gmra.mrb[28].mxu1 %v514_v30  ;;  %2211 = vmatprep.subr.bf16.mxu0 %v4496_v46  ;;  %v4506_v30 = vld [vmem:[%s6533_s3 + $0x220] ss:$16 sps:$4 sm:$0xff]   ;;  %v1236_v46 = vadd.s32 %v5487_v56, %v1219_v31  ;;  %vm1251_vm6 = vcmp.lt.s32.totalorder %v1235_v40, 200  ;;  %v4532_v31 = vld [vmem:[%s6533_s3 + $0x2a4] ss:$16 sps:$4 sm:$0xff]  }
  0x94   : > { %2436 = vmatpush1.bf16.msra.mxu1 %v4485_v41  ;;  %v592_v41 = vsub.s32 2, %v5476_v51 }
  0x95   : > { %2437 = vmatprep.subr.bf16.mxu1 %v4493_v44  ;;  %v4509_v44 = vld [vmem:[%s6533_s3 + $0x248] ss:$16 sps:$4 sm:$0xff]   ;;  %vm1252_vm7 = vcmp.lt.s32.totalorder %v1236_v46, 200  ;;  %v1222_v46 = vadd.s32 64, %v5476_v51 }
  0x96   : > { %2212 = vmatpush1.bf16.msra.mxu0 %v4494_v47  ;;  %v596_v47 = vsub.s32 3, %v5476_v51  ;;  %vm5627_vm8 = vmpackc.low %vm1252_vm7, %vm1251_vm6 }
  0x97   : > { %2294 = vmatprep.subr.bf16.mxu0 %v4502_v49 }
  0x98   : > { %2438 = vmatpush1.bf16.msra.mxu1 %v4491_v45  ;;  %v4512_v45 = vld [vmem:[%s6533_s3 + $0x240] ss:$16 sps:$4 sm:$0xff]   ;;  %v5616_v6 = vrot.slane %v5483_v53, %v596_v47 }
  0x99   : > { %2520 = vmatprep.subr.bf16.mxu1 %v4499_v48 }
 0x12c   : > { %v956_v60 = vpop.f32.mrb[0].mxu0 }
 0x12d   : > { %v957_v62 = vadd.f32 %v956_v60, %v5492_v57  ;;  %v958_v63 = vpop.f32.mrb[1].mxu0 }
 0x12e   : > { %v959_v0 = vadd.f32 %v958_v63, %v5497_v58  ;;  %v960_v1 = vpop.f32.mrb[2].mxu0 }
 0x12f   : > { %v961_v2 = vadd.f32 %v960_v1, %v5492_v57  ;;  %v962_v3 = vpop.f32.mrb[3].mxu0  ;;  %v1148_v7 = vmax.f32 %v957_v62, 0.0  ;;  %v5603_v1 = vrot.slane %v5483_v53, %v592_v41 }
 0x130   : > { %v963_v4 = vadd.f32 %v962_v3, %v5497_v58  ;;  %v1149_v9 = vmax.f32 %v959_v0, 0.0  ;;  %v1220_v0 = vadd.s32 48, %v5476_v51  ;;  %v4515_v3 = vld [vmem:[%s6533_s3 + $0x268] ss:$16 sps:$4 sm:$0xff]  }
 0x131   : > { %v1152_v8 = vmax.f32 %v961_v2, 0.0 }
 0x132   : > { %v1153_v10 = vmax.f32 %v963_v4, 0.0  ;;  %v4518_v4 = vld [vmem:[%s6533_s3 + $0x260] ss:$16 sps:$4 sm:$0xff]  }
 0x133   : > { %v5508_v11 = vpack.c.bf16 %v1152_v8, %v1148_v7 }
 0x134   : > { %v5514_v13 = vpack.c.bf16 %v1153_v10, %v1149_v9  ;;  %v966_v14 = vpop.f32.mrb[4].mxu0  ;;  %v4523_v9 = vld [vmem:[%s6533_s3 + $0x28c] ss:$16 sps:$4 sm:$0xff]   ;;  %v4526_v10 = vld [vmem:[%s6533_s3 + $0x284] ss:$16 sps:$4 sm:$0xff]  }
 0x135   : > { %v967_v19 = vadd.f32 %v966_v14, %v5492_v57  ;;  %v968_v20 = vpop.f32.mrb[5].mxu0 }
 0x136   : > { %v969_v23 = vadd.f32 %v968_v20, %v5497_v58  ;;  %v970_v24 = vpop.f32.mrb[6].mxu0  ;;  %3712 = vmatprep.mubr.msk.bf16.mxu0 %vm5510_vm2, %v5514_v13  ;;  %3808 = vmatprep.mubr.msk.bf16.mxu1 %vm5510_vm2, %v5514_v13 }
 0x137   : > { %v971_v25 = vadd.f32 %v970_v24, %v5492_v57  ;;  %v972_v26 = vpop.f32.mrb[7].mxu0  ;;  %3715 = vmatmul.mubr.msk.bf16.vlgmr.msra.gmra.mrb[32].mxu0 %vm5510_vm2, %v5508_v11  ;;  %3811 = vmatmul.mubr.msk.bf16.vlgmr.msra.gmra.mrb[32].mxu1 %vm5510_vm2, %v5508_v11  ;;  %v1156_v32 = vmax.f32 %v967_v19, 0.0  ;;  %v1237_v19 = vadd.s32 %v5487_v56, %v1220_v0  ;;  %v4524_v24 = vld [vmem:[%s6533_s3 + $0x280] ss:$16 sps:$4 sm:$0xff]   ;;  %v4538_v0 = vld [vmem:[%s6533_s3 + $0x2c4] ss:$16 sps:$4 sm:$0xff]  }
 0x138   : > { %v973_v29 = vadd.f32 %v972_v26, %v5497_v58  ;;  %2521 = vmatpush1.bf16.msra.mxu1 %v4497_v15  ;;  %2295 = vmatpush1.bf16.msra.mxu0 %v4500_v16  ;;  %v1157_v36 = vmax.f32 %v969_v23, 0.0  ;;  %v1069_v16 = vpop.f32.mrb[0].mxu1  ;;  %v1238_v26 = vadd.s32 %v5487_v56, %v1221_v5 }
 0x139   : > { %v1160_v33 = vmax.f32 %v971_v25, 0.0  ;;  %2522 = vmatprep.subr.bf16.mxu1 %v4505_v21  ;;  %2296 = vmatprep.subr.bf16.mxu0 %v4508_v22  ;;  %v1070_v20 = vadd.f32 %v1069_v16, %v5603_v1  ;;  %v1071_v21 = vpop.f32.mrb[1].mxu1  ;;  %v4529_v25 = vld [vmem:[%s6533_s3 + $0x2ac] ss:$16 sps:$4 sm:$0xff]   ;;  %vm1253_vm9 = vcmp.lt.s32.totalorder %v1237_v19, 200 }
 0x13a   : > { %v1161_v37 = vmax.f32 %v973_v29, 0.0  ;;  %v1073_v28 = vpop.f32.mrb[2].mxu1  ;;  %vm1254_vm10 = vcmp.lt.s32.totalorder %v1238_v26, 200  ;;  %v4536_v19 = vld [vmem:[%s6533_s3 + $0x2c0] ss:$16 sps:$4 sm:$0xff]  }
 0x13b   : > { %v5560_v38 = vpack.c.bf16 %v1160_v33, %v1156_v32  ;;  %v1150_v32 = vmax.f32 %v1070_v20, 0.0  ;;  %v1074_v33 = vadd.f32 %v1073_v28, %v5603_v1  ;;  %vm5689_vm11 = vmpackc.low %vm1254_vm10, %vm1253_vm9  ;;  %v4544_v28 = vld [vmem:[%s6533_s3 + $0x2e4] ss:$16 sps:$4 sm:$0xff]  }
 0x13c   : > { %v5568_v42 = vpack.c.bf16 %v1161_v37, %v1157_v36  ;;  %2523 = vmatpush1.bf16.msra.mxu1 %v4503_v27  ;;  %v976_v43 = vpop.f32.mrb[8].mxu0  ;;  %2297 = vmatpush1.bf16.msra.mxu0 %v4506_v30  ;;  %v1072_v27 = vadd.f32 %v1071_v21, %v5616_v6  ;;  %v4541_v21 = vld [vmem:[%s6533_s3 + $0x2ec] ss:$16 sps:$4 sm:$0xff]  }
 0x13d   : > { %v977_v48 = vadd.f32 %v976_v43, %v5492_v57  ;;  %v978_v49 = vpop.f32.mrb[9].mxu0  ;;  %2524 = vmatprep.subr.bf16.mxu1 %v4511_v34  ;;  %2298 = vmatprep.subr.bf16.mxu0 %v4514_v35  ;;  %v1075_v34 = vpop.f32.mrb[3].mxu1 }
 0x13e   : > { %v979_v60 = vadd.f32 %v978_v49, %v5497_v58  ;;  %v980_v61 = vpop.f32.mrb[10].mxu0  ;;  %3718 = vmatprep.mubr.msk.bf16.mxu0 %vm5562_vm5, %v5568_v42  ;;  %3814 = vmatprep.mubr.msk.bf16.mxu1 %vm5562_vm5, %v5568_v42  ;;  %v1151_v37 = vmax.f32 %v1072_v27, 0.0  ;;  %v1076_v40 = vadd.f32 %v1075_v34, %v5616_v6 }
 0x13f   : > { %v981_v62 = vadd.f32 %v980_v61, %v5492_v57  ;;  %v982_v63 = vpop.f32.mrb[11].mxu0  ;;  %3721 = vmatmul.mubr.msk.bf16.gmra.mrb[36].mxu0 %vm5562_vm5, %v5560_v38  ;;  %3817 = vmatmul.mubr.msk.bf16.gmra.mrb[36].mxu1 %vm5562_vm5, %v5560_v38  ;;  %v1164_v7 = vmax.f32 %v977_v48, 0.0  ;;  %v1154_v48 = vmax.f32 %v1074_v33, 0.0 }
 0x140   : > { %v983_v2 = vadd.f32 %v982_v63, %v5497_v58  ;;  %2525 = vmatpush1.bf16.msra.mxu1 %v4509_v44  ;;  %2299 = vmatpush1.bf16.msra.mxu0 %v4512_v45  ;;  %v1165_v14 = vmax.f32 %v979_v60, 0.0  ;;  %v4527_v45 = vld [vmem:[%s6533_s3 + $0x2a8] ss:$16 sps:$4 sm:$0xff]   ;;  %v1155_v60 = vmax.f32 %v1076_v40, 0.0  ;;  %v4535_v63 = vld [vmem:[%s6533_s3 + $0x2cc] ss:$16 sps:$4 sm:$0xff]  }
 0x141   : > { %v1168_v8 = vmax.f32 %v981_v62, 0.0  ;;  %2526 = vmatprep.subr.bf16.mxu1 %v4517_v55  ;;  %2300 = vmatprep.subr.bf16.mxu0 %v4520_v59  ;;  %v4530_v55 = vld [vmem:[%s6533_s3 + $0x2a0] ss:$16 sps:$4 sm:$0xff]   ;;  %v1223_v59 = vadd.s32 72, %v5476_v51  ;;  %v4539_v40 = vld [vmem:[%s6533_s3 + $0x2e8] ss:$16 sps:$4 sm:$0xff]  }
 0x142   : > { %v1169_v15 = vmax.f32 %v983_v2, 0.0  ;;  %v5681_v2 = vpack.c.bf16 %v1154_v48, %v1150_v32  ;;  %v5683_v5 = vpack.c.bf16 %v1155_v60, %v1151_v37  ;;  %v1225_v48 = vadd.s32 88, %v5476_v51  ;;  %v4547_v60 = vld [vmem:[%s6533_s3 + $0x30c] ss:$16 sps:$4 sm:$0xff]  }
 0x143   : > { %v5624_v17 = vpack.c.bf16 %v1168_v8, %v1164_v7  ;;  %v1079_v7 = vpop.f32.mrb[4].mxu1 }
 0x144   : > { %v5636_v22 = vpack.c.bf16 %v1169_v15, %v1165_v14  ;;  %2527 = vmatpush1.bf16.msra.mxu1 %v4515_v3  ;;  %v986_v23 = vpop.f32.mrb[12].mxu0  ;;  %2301 = vmatpush1.bf16.msra.mxu0 %v4518_v4  ;;  %v1239_v14 = vadd.s32 %v5487_v56, %v1222_v46  ;;  %v1080_v15 = vadd.f32 %v1079_v7, %v5603_v1  ;;  %v1081_v16 = vpop.f32.mrb[5].mxu1  ;;  %v4542_v46 = vld [vmem:[%s6533_s3 + $0x2e0] ss:$16 sps:$4 sm:$0xff]  }
 0x145   : > { %v987_v29 = vadd.f32 %v986_v23, %v5492_v57  ;;  %v988_v30 = vpop.f32.mrb[13].mxu0  ;;  %2528 = vmatprep.subr.bf16.mxu1 %v4523_v9  ;;  %2302 = vmatprep.subr.bf16.mxu0 %v4526_v10  ;;  %v4533_v10 = vld [vmem:[%s6533_s3 + $0x2c8] ss:$16 sps:$4 sm:$0xff]   ;;  %v1240_v23 = vadd.s32 %v5487_v56, %v1223_v59 }
 0x146   : > { %v989_v35 = vadd.f32 %v988_v30, %v5497_v58  ;;  %v990_v36 = vpop.f32.mrb[14].mxu0  ;;  %3724 = vmatprep.mubr.msk.bf16.mxu0 %vm5627_vm8, %v5636_v22  ;;  %3820 = vmatprep.mubr.msk.bf16.mxu1 %vm5627_vm8, %v5636_v22  ;;  %vm1255_vm12 = vcmp.lt.s32.totalorder %v1239_v14, 200  ;;  %v4548_v14 = vld [vmem:[%s6533_s3 + $0x300] ss:$16 sps:$4 sm:$0xff]  }
 0x147   : > { %v991_v43 = vadd.f32 %v990_v36, %v5492_v57  ;;  %v992_v44 = vpop.f32.mrb[15].mxu0  ;;  %3727 = vmatmul.mubr.msk.bf16.gmra.mrb[40].mxu0 %vm5627_vm8, %v5624_v17  ;;  %3823 = vmatmul.mubr.msk.bf16.gmra.mrb[40].mxu1 %vm5627_vm8, %v5624_v17  ;;  %v1172_v61 = vmax.f32 %v987_v29, 0.0  ;;  %v1158_v29 = vmax.f32 %v1080_v15, 0.0  ;;  %vm1256_vm13 = vcmp.lt.s32.totalorder %v1240_v23, 200  ;;  %v4545_v15 = vld [vmem:[%s6533_s3 + $0x308] ss:$16 sps:$4 sm:$0xff]  }
 0x148   : > { %v993_v49 = vadd.f32 %v992_v44, %v5497_v58  ;;  %2529 = vmatpush1.bf16.msra.mxu1 %v4521_v18  ;;  %2303 = vmatpush1.bf16.msra.mxu0 %v4524_v24  ;;  %v1173_v3 = vmax.f32 %v989_v35, 0.0  ;;  %v1082_v24 = vadd.f32 %v1081_v16, %v5616_v6  ;;  %vm5751_vm14 = vmpackc.low %vm1256_vm13, %vm1255_vm12  ;;  %v4553_v23 = vld [vmem:[%s6533_s3 + $0x32c] ss:$16 sps:$4 sm:$0xff]   ;;  %vm462_vm12 = vcmask 3072  }
 0x149   : > { %v1176_v62 = vmax.f32 %v991_v43, 0.0  ;;  %2530 = vmatprep.subr.bf16.mxu1 %v4529_v25  ;;  %2304 = vmatprep.subr.bf16.mxu0 %v4532_v31  ;;  %v1083_v25 = vpop.f32.mrb[6].mxu1  ;;  %v1224_v43 = vadd.s32 80, %v5476_v51 }
 0x14a   : > { %v1177_v4 = vmax.f32 %v993_v49, 0.0  ;;  %v1084_v30 = vadd.f32 %v1083_v25, %v5603_v1  ;;  %v1085_v31 = vpop.f32.mrb[7].mxu1  ;;  %v1159_v34 = vmax.f32 %v1082_v24, 0.0  ;;  %v1242_v25 = vadd.s32 %v5487_v56, %v1225_v48 }
 0x14b   : > { %v5685_v8 = vpack.c.bf16 %v1176_v62, %v1172_v61  ;;  %v1086_v35 = vadd.f32 %v1085_v31, %v5616_v6  ;;  %v4550_v61 = vld [vmem:[%s6533_s3 + $0x304] ss:$16 sps:$4 sm:$0xff]   ;;  %v1241_v16 = vadd.s32 %v5487_v56, %v1224_v43 }
 0x14c   : > { %v5698_v18 = vpack.c.bf16 %v1177_v4, %v1173_v3  ;;  %2531 = vmatpush1.bf16.msra.mxu1 %v4527_v45  ;;  %v996_v20 = vpop.f32.mrb[16].mxu0  ;;  %2305 = vmatpush1.bf16.msra.mxu0 %v4530_v55  ;;  %v1162_v44 = vmax.f32 %v1084_v30, 0.0  ;;  %v1089_v4 = vpop.f32.mrb[8].mxu1  ;;  %v4556_v30 = vld [vmem:[%s6533_s3 + $0x324] ss:$16 sps:$4 sm:$0xff]   ;;  %vm1258_vm0 = vcmp.lt.s32.totalorder %v1242_v25, 200 }
 0x14d   : > { %v997_v26 = vadd.f32 %v996_v20, %v5492_v57  ;;  %v998_v27 = vpop.f32.mrb[17].mxu0  ;;  %2532 = vmatprep.subr.bf16.mxu1 %v4535_v63  ;;  %2306 = vmatprep.subr.bf16.mxu0 %v4538_v0  ;;  %v1163_v49 = vmax.f32 %v1086_v35, 0.0  ;;  %v1090_v20 = vadd.f32 %v1089_v4, %v5603_v1  ;;  %vm1257_vm15 = vcmp.lt.s32.totalorder %v1241_v16, 200  ;;  %v4560_v16 = vld [vmem:[%s6533_s3 + $0x340] ss:$16 sps:$4 sm:$0xff]  }
 0x14e   : > { %v999_v32 = vadd.f32 %v998_v27, %v5497_v58  ;;  %v1000_v33 = vpop.f32.mrb[18].mxu0  ;;  %3730 = vmatprep.mubr.msk.bf16.mxu0 %vm5689_vm11, %v5698_v18  ;;  %3826 = vmatprep.mubr.msk.bf16.mxu1 %vm5689_vm11, %v5698_v18  ;;  %v5743_v62 = vpack.c.bf16 %v1162_v44, %v1158_v29  ;;  %v4551_v44 = vld [vmem:[%s6533_s3 + $0x328] ss:$16 sps:$4 sm:$0xff]   ;;  %vm5813_vm1 = vmpackc.low %vm1258_vm0, %vm1257_vm15  ;;  %v4565_v25 = vld [vmem:[%s6533_s3 + $0x36c] ss:$16 sps:$4 sm:$0xff]   ;;  %vm3176_vm15 = vcmask 1043456  }
 0x14f   : > { %v1001_v36 = vadd.f32 %v1000_v33, %v5492_v57  ;;  %v1002_v37 = vpop.f32.mrb[19].mxu0  ;;  %3733 = vmatmul.mubr.msk.bf16.gmra.mrb[44].mxu0 %vm5689_vm11, %v5685_v8  ;;  %3829 = vmatmul.mubr.msk.bf16.gmra.mrb[44].mxu1 %vm5689_vm11, %v5685_v8  ;;  %v1180_v55 = vmax.f32 %v997_v26, 0.0  ;;  %v5745_v3 = vpack.c.bf16 %v1163_v49, %v1159_v34  ;;  %v1166_v31 = vmax.f32 %v1090_v20, 0.0  ;;  %v4554_v49 = vld [vmem:[%s6533_s3 + $0x320] ss:$16 sps:$4 sm:$0xff]  }
 0x150   : > { %v1003_v45 = vadd.f32 %v1002_v37, %v5497_v58  ;;  %2533 = vmatpush1.bf16.msra.mxu1 %v4533_v10  ;;  %2307 = vmatpush1.bf16.msra.mxu0 %v4536_v19  ;;  %v1181_v63 = vmax.f32 %v999_v32, 0.0  ;;  %v1091_v19 = vpop.f32.mrb[9].mxu1 }
 0x151   : > { %v1184_v59 = vmax.f32 %v1001_v36, 0.0  ;;  %2534 = vmatprep.subr.bf16.mxu1 %v4541_v21  ;;  %2308 = vmatprep.subr.bf16.mxu0 %v4544_v28  ;;  %v1092_v26 = vadd.f32 %v1091_v19, %v5616_v6  ;;  %v1093_v27 = vpop.f32.mrb[10].mxu1 }
 0x152   : > { %v1185_v0 = vmax.f32 %v1003_v45, 0.0  ;;  %v1094_v32 = vadd.f32 %v1093_v27, %v5603_v1  ;;  %v1095_v33 = vpop.f32.mrb[11].mxu1  ;;  %v1226_v45 = vadd.s32 96, %v5476_v51 }
 0x153   : > { %v5747_v7 = vpack.c.bf16 %v1184_v59, %v1180_v55  ;;  %v1167_v36 = vmax.f32 %v1092_v26, 0.0  ;;  %v1096_v37 = vadd.f32 %v1095_v33, %v5616_v6  ;;  %v1227_v55 = vadd.s32 104, %v5476_v51  ;;  %v4557_v26 = vld [vmem:[%s6533_s3 + $0x348] ss:$16 sps:$4 sm:$0xff]  }
 0x154   : > { %v5760_v21 = vpack.c.bf16 %v1185_v0, %v1181_v63  ;;  %2535 = vmatpush1.bf16.msra.mxu1 %v4539_v40  ;;  %v1006_v24 = vpop.f32.mrb[20].mxu0  ;;  %2309 = vmatpush1.bf16.msra.mxu0 %v4542_v46  ;;  %v1170_v46 = vmax.f32 %v1094_v32, 0.0  ;;  %v4559_v63 = vld [vmem:[%s6533_s3 + $0x34c] ss:$16 sps:$4 sm:$0xff]   ;;  %v4562_v0 = vld [vmem:[%s6533_s3 + $0x344] ss:$16 sps:$4 sm:$0xff]   ;;  %v1243_v27 = vadd.s32 %v5487_v56, %v1226_v45 }
 0x155   : > { %v1007_v28 = vadd.f32 %v1006_v24, %v5492_v57  ;;  %v1008_v29 = vpop.f32.mrb[21].mxu0  ;;  %2536 = vmatprep.subr.bf16.mxu1 %v4547_v60  ;;  %2310 = vmatprep.subr.bf16.mxu0 %v4550_v61  ;;  %v1171_v59 = vmax.f32 %v1096_v37, 0.0  ;;  %v1099_v24 = vpop.f32.mrb[12].mxu1  ;;  %v1244_v32 = vadd.s32 %v5487_v56, %v1227_v55  ;;  %v4568_v37 = vld [vmem:[%s6533_s3 + $0x364] ss:$16 sps:$4 sm:$0xff]  }
 0x156   : > { %v1009_v34 = vadd.f32 %v1008_v29, %v5497_v58  ;;  %v1010_v35 = vpop.f32.mrb[22].mxu0  ;;  %3736 = vmatprep.mubr.msk.bf16.mxu0 %vm5751_vm14, %v5760_v21  ;;  %3832 = vmatprep.mubr.msk.bf16.mxu1 %vm5751_vm14, %v5760_v21  ;;  %v5805_v4 = vpack.c.bf16 %v1170_v46, %v1166_v31  ;;  %v1101_v29 = vpop.f32.mrb[13].mxu1  ;;  %vm1259_vm3 = vcmp.lt.s32.totalorder %v1243_v27, 200  ;;  %v4572_v27 = vld [vmem:[%s6533_s3 + $0x380] ss:$16 sps:$4 sm:$0xff]  }
 0x157   : > { %v1011_v40 = vadd.f32 %v1010_v35, %v5492_v57  ;;  %v1012_v43 = vpop.f32.mrb[23].mxu0  ;;  %3739 = vmatmul.mubr.msk.bf16.gmra.mrb[48].mxu0 %vm5751_vm14, %v5747_v7  ;;  %3835 = vmatmul.mubr.msk.bf16.gmra.mrb[48].mxu1 %vm5751_vm14, %v5747_v7  ;;  %v1188_v60 = vmax.f32 %v1007_v28, 0.0  ;;  %v5807_v19 = vpack.c.bf16 %v1171_v59, %v1167_v36  ;;  %v1100_v28 = vadd.f32 %v1099_v24, %v5603_v1 }
 0x158   : > { %v1013_v48 = vadd.f32 %v1012_v43, %v5497_v58  ;;  %2537 = vmatpush1.bf16.msra.mxu1 %v4545_v15  ;;  %2311 = vmatpush1.bf16.msra.mxu0 %v4548_v14  ;;  %v1189_v15 = vmax.f32 %v1009_v34, 0.0  ;;  %v1102_v33 = vadd.f32 %v1101_v29, %v5616_v6  ;;  %v1103_v34 = vpop.f32.mrb[14].mxu1  ;;  %vm1260_vm4 = vcmp.lt.s32.totalorder %v1244_v32, 200  ;;  %v4577_v32 = vld [vmem:[%s6533_s3 + $0x3ac] ss:$16 sps:$4 sm:$0xff]  }
 0x159   : > { %v1192_v61 = vmax.f32 %v1011_v40, 0.0  ;;  %2538 = vmatprep.subr.bf16.mxu1 %v4553_v23  ;;  %2312 = vmatprep.subr.bf16.mxu0 %v4556_v30  ;;  %v6573_v23 = vmov 0  ;;  %v1174_v40 = vmax.f32 %v1100_v28, 0.0  ;;  %v1104_v43 = vadd.f32 %v1103_v34, %v5603_v1  ;;  %vm5875_vm6 = vmpackc.low %vm1260_vm4, %vm1259_vm3 }
 0x15a   : > { %v1193_v20 = vmax.f32 %v1013_v48, 0.0  ;;  %v6574_v23 = vsel %vm5813_vm1, 4294967295, %v6573_v23  ;;  %v1175_v48 = vmax.f32 %v1102_v33, 0.0 }
 0x15b   : > { %v5809_v14 = vpack.c.bf16 %v1192_v61, %v1188_v60  ;;  %6575 = vst [vmem:[#allocation12_spill] sm:$0xff] %v6574_v23  ;;  %v4563_v60 = vld [vmem:[%s6533_s3 + $0x368] ss:$16 sps:$4 sm:$0xff]   ;;  %v1228_v61 = vadd.s32 112, %v5476_v51 }
 0x15c   : > { %v5822_v30 = vpack.c.bf16 %v1193_v20, %v1189_v15  ;;  %2539 = vmatpush1.bf16.msra.mxu1 %v4551_v44  ;;  %v1016_v31 = vpop.f32.mrb[24].mxu0  ;;  %2313 = vmatpush1.bf16.msra.mxu0 %v4554_v49  ;;  %v1105_v44 = vpop.f32.mrb[15].mxu1  ;;  %v4566_v15 = vld [vmem:[%s6533_s3 + $0x360] ss:$16 sps:$4 sm:$0xff]   ;;  %v1229_v20 = vadd.s32 120, %v5476_v51 }
 0x15d   : > { %v1017_v35 = vadd.f32 %v1016_v31, %v5492_v57  ;;  %v1018_v36 = vpop.f32.mrb[25].mxu0  ;;  %2540 = vmatprep.subr.bf16.mxu1 %v4559_v63  ;;  %2314 = vmatprep.subr.bf16.mxu0 %v4562_v0  ;;  %v1106_v49 = vadd.f32 %v1105_v44, %v5616_v6  ;;  %v1178_v63 = vmax.f32 %v1104_v43, 0.0  ;;  %v4571_v31 = vld [vmem:[%s6533_s3 + $0x38c] ss:$16 sps:$4 sm:$0xff]   ;;  %v1109_v43 = vpop.f32.mrb[16].mxu1 }
 0x15e   : > { %v1019_v45 = vadd.f32 %v1018_v36, %v5497_v58  ;;  %v1020_v46 = vpop.f32.mrb[26].mxu0  ;;  %3742 = vmatprep.mubr.msk.bf16.mxu0 %vm5813_vm1, %v5822_v30  ;;  %3838 = vmatprep.mubr.msk.bf16.mxu1 %vm5813_vm1, %v5822_v30 }
 0x15f   : > { %v1021_v55 = vadd.f32 %v1020_v46, %v5492_v57  ;;  %v1022_v59 = vpop.f32.mrb[27].mxu0  ;;  %3745 = vmatmul.mubr.msk.bf16.gmra.mrb[52].mxu0 %vm5813_vm1, %v5809_v14  ;;  %3841 = vmatmul.mubr.msk.bf16.gmra.mrb[52].mxu1 %vm5813_vm1, %v5809_v14  ;;  %v1179_v24 = vmax.f32 %v1106_v49, 0.0  ;;  %v1196_v28 = vmax.f32 %v1017_v35, 0.0  ;;  %v4569_v35 = vld [vmem:[%s6533_s3 + $0x388] ss:$16 sps:$4 sm:$0xff]   ;;  %v1246_v49 = vadd.s32 %v5487_v56, %v1229_v20 }
 0x160   : > { %v1023_v0 = vadd.f32 %v1022_v59, %v5497_v58  ;;  %2541 = vmatpush1.bf16.msra.mxu1 %v4557_v26  ;;  %2315 = vmatpush1.bf16.msra.mxu0 %v4560_v16  ;;  %v4574_v26 = vld [vmem:[%s6533_s3 + $0x384] ss:$16 sps:$4 sm:$0xff]   ;;  %v5867_v16 = vpack.c.bf16 %v1178_v63, %v1174_v40  ;;  %v1197_v33 = vmax.f32 %v1019_v45, 0.0  ;;  %v1110_v40 = vadd.f32 %v1109_v43, %v5603_v1  ;;  %v1111_v45 = vpop.f32.mrb[17].mxu1 }
 0x161   : > { %v1200_v29 = vmax.f32 %v1021_v55, 0.0  ;;  %2542 = vmatprep.subr.bf16.mxu1 %v4565_v25  ;;  %2316 = vmatprep.subr.bf16.mxu0 %v4568_v37  ;;  %v5869_v36 = vpack.c.bf16 %v1179_v24, %v1175_v48  ;;  %v6576_v25 = vmov 0  ;;  %v1245_v37 = vadd.s32 %v5487_v56, %v1228_v61  ;;  %v1113_v59 = vpop.f32.mrb[18].mxu1 }
 0x162   : > { %v1201_v34 = vmax.f32 %v1023_v0, 0.0  ;;  %v6577_v25 = vsel %vm5875_vm6, 4294967295, %v6576_v25  ;;  %v1112_v55 = vadd.f32 %v1111_v45, %v5616_v6  ;;  %v1182_v0 = vmax.f32 %v1110_v40, 0.0  ;;  %v1115_v24 = vpop.f32.mrb[19].mxu1 }
 0x163   : > { %v5871_v44 = vpack.c.bf16 %v1200_v29, %v1196_v28  ;;  %6578 = vst [vmem:[#allocation13_spill] sm:$0xff] %v6577_v25  ;;  %vm1261_vm7 = vcmp.lt.s32.totalorder %v1245_v37, 200  ;;  %vm1262_vm9 = vcmp.lt.s32.totalorder %v1246_v49, 200  ;;  %v1119_v49 = vpop.f32.mrb[20].mxu1 }
 0x164   : > { %v5884_v46 = vpack.c.bf16 %v1201_v34, %v1197_v33  ;;  %2543 = vmatpush1.bf16.msra.mxu1 %v4563_v60  ;;  %v1026_v48 = vpop.f32.mrb[28].mxu0  ;;  %2317 = vmatpush1.bf16.msra.mxu0 %v4566_v15  ;;  %v4580_v60 = vld [vmem:[%s6533_s3 + $0x3a4] ss:$16 sps:$4 sm:$0xff]   ;;  %v1114_v15 = vadd.f32 %v1113_v59, %v5603_v1  ;;  %v1183_v20 = vmax.f32 %v1112_v55, 0.0  ;;  %v4575_v34 = vld [vmem:[%s6533_s3 + $0x3a8] ss:$16 sps:$4 sm:$0xff]   ;;  %vm5934_vm10 = vmpackc.low %vm1262_vm9, %vm1261_vm7 }
 0x165   : > { %v1027_v61 = vadd.f32 %v1026_v48, %v5492_v57  ;;  %v1028_v63 = vpop.f32.mrb[29].mxu0  ;;  %2544 = vmatprep.subr.bf16.mxu1 %v4571_v31  ;;  %2318 = vmatprep.subr.bf16.mxu0 %v4574_v26  ;;  %v1116_v31 = vadd.f32 %v1115_v24, %v5616_v6  ;;  %v4583_v59 = vld [vmem:[%s6533_s3 + $0x3cc] ss:$16 sps:$4 sm:$0xff]  }
 0x166   : > { %v1029_v28 = vadd.f32 %v1028_v63, %v5497_v58  ;;  %v1030_v29 = vpop.f32.mrb[30].mxu0  ;;  %3748 = vmatprep.mubr.msk.bf16.mxu0 %vm5875_vm6, %v5884_v46  ;;  %3844 = vmatprep.mubr.msk.bf16.mxu1 %vm5875_vm6, %v5884_v46  ;;  %v1186_v43 = vmax.f32 %v1114_v15, 0.0 }
 0x167   : > { %v1031_v26 = vadd.f32 %v1030_v29, %v5492_v57  ;;  %v1032_v33 = vpop.f32.mrb[31].mxu0  ;;  %3751 = vmatmul.mubr.msk.bf16.gmra.mrb[56].mxu0 %vm5875_vm6, %v5871_v44  ;;  %3847 = vmatmul.mubr.msk.bf16.gmra.mrb[56].mxu1 %vm5875_vm6, %v5871_v44  ;;  %v4578_v57 = vld [vmem:[%s6533_s3 + $0x3a0] ss:$16 sps:$4 sm:$0xff]   ;;  %v1187_v45 = vmax.f32 %v1116_v31, 0.0  ;;  %v1204_v48 = vmax.f32 %v1027_v61, 0.0  ;;  %v1120_v61 = vadd.f32 %v1119_v49, %v5603_v1 }
 0x168   : > { %v1033_v40 = vadd.f32 %v1032_v33, %v5497_v58  ;;  %2545 = vmatpush1.bf16.msra.mxu1 %v4569_v35  ;;  %2319 = vmatpush1.bf16.msra.mxu0 %v4572_v27  ;;  %v4586_v58 = vld [vmem:[%s6533_s3 + $0x3c4] ss:$16 sps:$4 sm:$0xff]   ;;  %v5927_v35 = vpack.c.bf16 %v1186_v43, %v1182_v0  ;;  %v1205_v27 = vmax.f32 %v1029_v28, 0.0  ;;  %v4581_v0 = vld [vmem:[%s6533_s3 + $0x3c8] ss:$16 sps:$4 sm:$0xff]  }
 0x169   : > { %v1208_v55 = vmax.f32 %v1031_v26, 0.0  ;;  %2546 = vmatprep.subr.bf16.mxu1 %v4577_v32  ;;  %2320 = vmatprep.subr.bf16.mxu0 %v4580_v60  ;;  %v5929_v15 = vpack.c.bf16 %v1187_v45, %v1183_v20  ;;  %v6579_v32 = vmov 0  ;;  %v1121_v60 = vpop.f32.mrb[21].mxu1  ;;  %v4584_v28 = vld [vmem:[%s6533_s3 + $0x3c0] ss:$16 sps:$4 sm:$0xff]   ;;  %v1190_v33 = vmax.f32 %v1120_v61, 0.0 }
 0x16a   : > { %v1209_v63 = vmax.f32 %v1033_v40, 0.0  ;;  %v6580_v32 = vsel %vm5934_vm10, 4294967295, %v6579_v32  ;;  %v1122_v37 = vadd.f32 %v1121_v60, %v5616_v6  ;;  %v1123_v20 = vpop.f32.mrb[22].mxu1  ;;  %v4589_v31 = vld [vmem:[%s6533_s3 + $0x3ec] ss:$16 sps:$4 sm:$0xff]  }
 0x16b   : > { %v5931_v24 = vpack.c.bf16 %v1208_v55, %v1204_v48  ;;  %6581 = vst [vmem:[#allocation14_spill] sm:$0xff] %v6580_v32  ;;  %v4592_v26 = vld [vmem:[%s6533_s3 + $0x3e4] ss:$16 sps:$4 sm:$0xff]   ;;  %v1125_v43 = vpop.f32.mrb[23].mxu1  ;;  %v4587_v48 = vld [vmem:[%s6533_s3 + $0x3e8] ss:$16 sps:$4 sm:$0xff]  }
 0x16c   : > { %v5939_v29 = vpack.c.bf16 %v1209_v63, %v1205_v27  ;;  %2547 = vmatpush1.bf16.msra.mxu1 %v4575_v34  ;;  %2321 = vmatpush1.bf16.msra.mxu0 %v4578_v57  ;;  %v1124_v34 = vadd.f32 %v1123_v20, %v5603_v1  ;;  %v1191_v40 = vmax.f32 %v1122_v37, 0.0  ;;  %v1126_v57 = vadd.f32 %v1125_v43, %v5616_v6  ;;  %v4590_v55 = vld [vmem:[%s6533_s3 + $0x3e0] ss:$16 sps:$4 sm:$0xff]   ;;  %v1129_v49 = vpop.f32.mrb[24].mxu1  ;;  %v4595_v43 = vld [vmem:[%s6535_s5 + $0x48] sm:$0xff]  }
 0x16d   : > { %2548 = vmatprep.subr.bf16.mxu1 %v4583_v59  ;;  %2322 = vmatprep.subr.bf16.mxu0 %v4586_v58  ;;  %v4593_v27 = vld [vmem:[%s6535_s5 + $0x40] sm:$0xff]   ;;  %v1130_v61 = vadd.f32 %v1129_v49, %v5603_v1  ;;  %v1131_v60 = vpop.f32.mrb[25].mxu1 }
 0x16e   : > { %3754 = vmatprep.mubr.msk.bf16.mxu0 %vm5934_vm10, %v5939_v29  ;;  %3850 = vmatprep.mubr.msk.bf16.mxu1 %vm5934_vm10, %v5939_v29  ;;  %v1194_v45 = vmax.f32 %v1124_v34, 0.0  ;;  %v1195_v59 = vmax.f32 %v1126_v57, 0.0  ;;  %v4594_v34 = vld [vmem:[%s6535_s5] sm:$0xff]  }
 0x16f   : > { %3757 = vmatmul.mubr.msk.bf16.gmra.mrb[60].mxu0 %vm5934_vm10, %v5931_v24  ;;  %3853 = vmatmul.mubr.msk.bf16.gmra.mrb[60].mxu1 %vm5934_vm10, %v5931_v24  ;;  %v1198_v37 = vmax.f32 %v1130_v61, 0.0 }
 0x170   : > { %2549 = vmatpush1.bf16.msra.mxu1 %v4581_v0  ;;  %2323 = vmatpush1.bf16.msra.mxu0 %v4584_v28  ;;  %v5974_v58 = vpack.c.bf16 %v1194_v45, %v1190_v33  ;;  %v5985_v63 = vpack.c.bf16 %v1195_v59, %v1191_v40  ;;  %v1132_v0 = vadd.f32 %v1131_v60, %v5616_v6  ;;  %v1133_v28 = vpop.f32.mrb[26].mxu1 }
 0x171   : > { %2550 = vmatprep.subr.bf16.mxu1 %v4589_v31  ;;  %2324 = vmatprep.subr.bf16.mxu0 %v4592_v26  ;;  %v1134_v20 = vadd.f32 %v1133_v28, %v5603_v1  ;;  %v1135_v31 = vpop.f32.mrb[27].mxu1 }
 0x172   : > { %6582 = vst [vmem:[#allocation15_spill] sm:$0xff] %v5974_v58  ;;  %3760 = vmatprep.mubr.msk.bf16.mxu0 %vm5510_vm2, %v5683_v5  ;;  %3856 = vmatprep.mubr.msk.bf16.mxu1 %vm5510_vm2, %v5683_v5  ;;  %v1199_v26 = vmax.f32 %v1132_v0, 0.0  ;;  %v1136_v33 = vadd.f32 %v1135_v31, %v5616_v6 }
 0x174   : > { %2551 = vmatpush1.bf16.msra.mxu1 %v4587_v48  ;;  %2325 = vmatpush1.bf16.msra.mxu0 %v4590_v55  ;;  %v1203_v40 = vmax.f32 %v1136_v33, 0.0  ;;  %v1139_v48 = vpop.f32.mrb[28].mxu1 }
 0x175   : > { %3953 = vmatprep.subr.msk.bf16.mxu1 %vm5510_vm2, %v5514_v13  ;;  %4053 = vmatprep.subr.bf16.mxu0 %v4593_v27  ;;  %v1202_v13 = vmax.f32 %v1134_v20, 0.0  ;;  %v1140_v55 = vadd.f32 %v1139_v48, %v5603_v1  ;;  %v1141_v59 = vpop.f32.mrb[29].mxu1 }
 0x176   : > { %v6020_v45 = vpack.c.bf16 %v1203_v40, %v1199_v26  ;;  %v1143_v27 = vpop.f32.mrb[30].mxu1 }
 0x177   : > { %3763 = vmatmul.mubr.msk.bf16.vlgmr.msra.gmra.mrb[32].mxu0 %vm5510_vm2, %v5681_v2  ;;  %3859 = vmatmul.mubr.msk.bf16.vlgmr.msra.gmra.mrb[32].mxu1 %vm5510_vm2, %v5681_v2  ;;  %v6018_v57 = vpack.c.bf16 %v1202_v13, %v1198_v37  ;;  %v1206_v49 = vmax.f32 %v1140_v55, 0.0  ;;  %v1144_v61 = vadd.f32 %v1143_v27, %v5603_v1  ;;  %v1145_v60 = vpop.f32.mrb[31].mxu1  ;;  %v4597_v37 = vld [vmem:[%s6535_s5 + $0x50] sm:$0xff]  }
 0x178   : > { %3956 = vmatpush1.bf16.msk.msra.mxu1 %vm5510_vm2, %v5508_v11  ;;  %3766 = vmatprep.mubr.msk.bf16.mxu0 %vm5562_vm5, %v5745_v3  ;;  %6584 = vst [vmem:[#allocation17_spill] sm:$0xff] %v6020_v45  ;;  %v4596_v11 = vld [vmem:[%s6535_s5 + $0x8] sm:$0xff]   ;;  %v1146_v28 = vadd.f32 %v1145_v60, %v5616_v6  ;;  %v4598_v1 = vld [vmem:[%s6535_s5 + $0x10] sm:$0xff]  }
 0x179   : > { %3959 = vmatprep.subr.msk.bf16.mxu1 %vm5562_vm5, %v5568_v42  ;;  %3862 = vmatprep.mubr.msk.bf16.mxu1 %vm5562_vm5, %v5745_v3  ;;  %6583 = vst [vmem:[#allocation16_spill] sm:$0xff] %v6018_v57  ;;  %v1142_v42 = vadd.f32 %v1141_v59, %v5616_v6  ;;  %v6589_v53 = vld [vmem:[#allocation15_spill] sm:$0xff] }
 0x17a   : > { %4054 = vmatpush3.bf16.msra.mxu0 %v4594_v34  ;;  %v1211_v6 = vmax.f32 %v1146_v28, 0.0 }
 0x17b   : > { %4055 = vmatprep.subr.bf16.mxu0 %v4595_v43  ;;  %v1207_v0 = vmax.f32 %v1142_v42, 0.0 }
 0x17c   : > { %3962 = vmatpush1.bf16.msk.msra.mxu1 %vm5562_vm5, %v5560_v38  ;;  %v1210_v38 = vmax.f32 %v1144_v61, 0.0 }
 0x17d   : > { %3965 = vmatprep.subr.msk.bf16.mxu1 %vm5627_vm8, %v5636_v22  ;;  %v4599_v22 = vld [vmem:[%s6535_s5 + $0x58] sm:$0xff]  }
 0x17e   : > { %4056 = vmatpush3.bf16.msra.mxu0 %v4596_v11  ;;  %v6062_v20 = vpack.c.bf16 %v1210_v38, %v1206_v49 }
 0x17f   : > { %3769 = vmatmul.mubr.msk.bf16.gmra.mrb[36].mxu0 %vm5562_vm5, %v5743_v62  ;;  %3865 = vmatmul.mubr.msk.bf16.gmra.mrb[36].mxu1 %vm5562_vm5, %v5743_v62 }
 0x180   : > { %3968 = vmatpush1.bf16.msk.msra.mxu1 %vm5627_vm8, %v5624_v17  ;;  %3772 = vmatprep.mubr.msk.bf16.mxu0 %vm5627_vm8, %v5807_v19  ;;  %6585 = vst [vmem:[#allocation18_spill] sm:$0xff] %v6062_v20  ;;  %v6064_v17 = vpack.c.bf16 %v1211_v6, %v1207_v0 }
 0x181   : > { %3971 = vmatprep.subr.msk.bf16.mxu1 %vm5689_vm11, %v5698_v18  ;;  %3868 = vmatprep.mubr.msk.bf16.mxu1 %vm5627_vm8, %v5807_v19  ;;  %v4600_v18 = vld [vmem:[%s6535_s5 + $0x18] sm:$0xff]  }
 0x182   : > { %6586 = vst [vmem:[#allocation19_spill] sm:$0xff] %v6064_v17  ;;  %4057 = vmatprep.subr.bf16.mxu0 %v4597_v37 }
 0x183   : > { %4058 = vmatpush3.bf16.msra.mxu0 %v4598_v1 }
 0x184   : > { %3974 = vmatpush1.bf16.msk.msra.mxu1 %vm5689_vm11, %v5685_v8  ;;  %4059 = vmatprep.subr.bf16.mxu0 %v4599_v22  ;;  %v4602_v8 = vld [vmem:[%s6535_s5 + $0x20] sm:$0xff]  }
 0x185   : > { %3977 = vmatprep.subr.msk.bf16.mxu1 %vm5751_vm14, %v5760_v21  ;;  %v4604_v21 = vld [vmem:[%s6535_s5 + $0x28] sm:$0xff]  }
 0x187   : > { %3775 = vmatmul.mubr.msk.bf16.gmra.mrb[40].mxu0 %vm5627_vm8, %v5805_v4  ;;  %3871 = vmatmul.mubr.msk.bf16.gmra.mrb[40].mxu1 %vm5627_vm8, %v5805_v4 }
 0x188   : > { %3980 = vmatpush1.bf16.msk.msra.mxu1 %vm5751_vm14, %v5747_v7  ;;  %3778 = vmatprep.mubr.msk.bf16.mxu0 %vm5689_vm11, %v5869_v36  ;;  %v4603_v7 = vld [vmem:[%s6535_s5 + $0x68] sm:$0xff]  }
 0x189   : > { %3983 = vmatprep.subr.msk.bf16.mxu1 %vm5813_vm1, %v5822_v30  ;;  %3874 = vmatprep.mubr.msk.bf16.mxu1 %vm5689_vm11, %v5869_v36  ;;  %v4606_v30 = vld [vmem:[%s6535_s5 + $0x30] sm:$0xff]  }
 0x18a   : > { %4060 = vmatpush3.bf16.msra.mxu0 %v4600_v18 }
 0x18c   : > { %3986 = vmatpush1.bf16.msk.msra.mxu1 %vm5813_vm1, %v5809_v14  ;;  %v4605_v14 = vld [vmem:[%s6535_s5 + $0x70] sm:$0xff]  }
 0x18d   : > { %3989 = vmatprep.subr.msk.bf16.mxu1 %vm5875_vm6, %v5884_v46  ;;  %v4608_v46 = vld [vmem:[%s6535_s5 + $0x38] sm:$0xff]  }
 0x18f   : > { %3781 = vmatmul.mubr.msk.bf16.gmra.mrb[44].mxu0 %vm5689_vm11, %v5867_v16  ;;  %3877 = vmatmul.mubr.msk.bf16.gmra.mrb[44].mxu1 %vm5689_vm11, %v5867_v16 }
 0x190   : > { %3992 = vmatpush1.bf16.msk.msra.mxu1 %vm5875_vm6, %v5871_v44  ;;  %3784 = vmatprep.mubr.msk.bf16.mxu0 %vm5751_vm14, %v5929_v15  ;;  %v4607_v44 = vld [vmem:[%s6535_s5 + $0x78] sm:$0xff]  }
 0x191   : > { %3995 = vmatprep.subr.msk.bf16.mxu1 %vm5934_vm10, %v5939_v29  ;;  %3880 = vmatprep.mubr.msk.bf16.mxu1 %vm5751_vm14, %v5929_v15 }
 0x194   : > { %3998 = vmatpush1.bf16.msk.msra.mxu1 %vm5934_vm10, %v5931_v24  ;;  %v1519_v24 = vld [vmem:[%s6534_s4] sm:$0xf] }
 0x195   : > { %4001 = vmatprep.subr.msk.bf16.mxu1 %vm5510_vm2, %v5683_v5  ;;  %v4601_v5 = vld [vmem:[%s6535_s5 + $0x60] sm:$0xff]   ;;  %v6194_v29 = vrot.slane %v1519_v24, %v592_v41  ;;  %v6198_v31 = vrot.slane %v1519_v24, %v596_v47  ;;  %v6202_v34 = vrot.slane %v1519_v24, %v584_v52  ;;  %v6208_v59 = vrot.slane %v1519_v24, %v588_v54 }
 0x196   : > { %4061 = vmatprep.subr.bf16.mxu0 %v4601_v5 }
 0x197   : > { %3787 = vmatmul.mubr.msk.bf16.gmra.mrb[48].mxu0 %vm5751_vm14, %v5927_v35  ;;  %3883 = vmatmul.mubr.msk.bf16.gmra.mrb[48].mxu1 %vm5751_vm14, %v5927_v35 }
 0x198   : > { %3790 = vmatprep.mubr.msk.bf16.mxu0 %vm5813_vm1, %v5985_v63  ;;  %3886 = vmatprep.mubr.msk.bf16.mxu1 %vm5813_vm1, %v5985_v63 }
 0x199   : > { %4062 = vmatpush3.bf16.msra.mxu0 %v4602_v8 }
 0x19a   : > { %4063 = vmatprep.subr.bf16.mxu0 %v4603_v7 }
 0x19d   : > { %4064 = vmatpush3.bf16.msra.mxu0 %v4604_v21 }
 0x19e   : > { %4065 = vmatprep.subr.bf16.mxu0 %v4605_v14 }
 0x19f   : > { %3793 = vmatmul.mubr.msk.bf16.gmra.mrb[52].mxu0 %vm5813_vm1, %v5974_v58  ;;  %3889 = vmatmul.mubr.msk.bf16.gmra.mrb[52].mxu1 %vm5813_vm1, %v5974_v58 }
 0x1a0   : > { %3796 = vmatprep.mubr.msk.bf16.mxu0 %vm5875_vm6, %v6020_v45  ;;  %3892 = vmatprep.mubr.msk.bf16.mxu1 %vm5875_vm6, %v6020_v45 }
 0x1a1   : > { %4066 = vmatpush3.bf16.msra.mxu0 %v4606_v30 }
 0x1a2   : > { %4067 = vmatprep.subr.bf16.mxu0 %v4607_v44 }
 0x1a5   : > { %4068 = vmatpush3.bf16.msra.mxu0 %v4608_v46 }
 0x1a7   : > { %3799 = vmatmul.mubr.msk.bf16.gmra.mrb[56].mxu0 %vm5875_vm6, %v6018_v57  ;;  %3895 = vmatmul.mubr.msk.bf16.gmra.mrb[56].mxu1 %vm5875_vm6, %v6018_v57 }
 0x1a8   : > { %3802 = vmatprep.mubr.msk.bf16.mxu0 %vm5934_vm10, %v6064_v17  ;;  %3898 = vmatprep.mubr.msk.bf16.mxu1 %vm5934_vm10, %v6064_v17 }
 0x1af   : > { %3805 = vmatmul.mubr.msk.bf16.gmra.mrb[60].mxu0 %vm5934_vm10, %v6062_v20  ;;  %3901 = vmatmul.mubr.msk.bf16.gmra.mrb[60].mxu1 %vm5934_vm10, %v6062_v20 }
 0x24a   : > { %v2328_v26 = vpop.f32.mrb[32].mxu0  ;;  %v2554_v33 = vpop.f32.mrb[32].mxu1 }
 0x24b   : > { %v4149_v13 = vadd.f32 %v2554_v33, %v6194_v29  ;;  %v2330_v43 = vpop.f32.mrb[33].mxu0  ;;  %v2556_v40 = vpop.f32.mrb[33].mxu1  ;;  %v4117_v61 = vadd.f32 %v2328_v26, %v6202_v34 }
 0x24c   : > { %v4150_v48 = vadd.f32 %v2556_v40, %v6198_v31  ;;  %v2332_v11 = vpop.f32.mrb[34].mxu0  ;;  %v2558_v55 = vpop.f32.mrb[34].mxu1  ;;  %v4118_v28 = vadd.f32 %v2330_v43, %v6208_v59 }
 0x24d   : > { %v3902_v41 = vmul.f32 -1.442695, %v4149_v13  ;;  %v4151_v47 = vadd.f32 %v2558_v55, %v6194_v29  ;;  %v2334_v42 = vpop.f32.mrb[35].mxu0  ;;  %v2560_v27 = vpop.f32.mrb[35].mxu1  ;;  %v4119_v37 = vadd.f32 %v2332_v11, %v6202_v34 }
 0x24e   : > { %v3903_v49 = vmul.f32 -1.442695, %v4150_v48  ;;  %v4152_v52 = vadd.f32 %v2560_v27, %v6198_v31  ;;  %v4120_v8 = vadd.f32 %v2334_v42, %v6208_v59 }
 0x24f   : > { %4609 = vpow2.f32 %v3902_v41  ;;  %v3904_v60 = vmul.f32 -1.442695, %v4151_v47 }
 0x250   : > { %4611 = vpow2.f32 %v3903_v49  ;;  %v3905_v0 = vmul.f32 -1.442695, %v4152_v52 }
 0x251   : > { %4613 = vpow2.f32 %v3904_v60 }
 0x252   : > { %v2338_v51 = vpop.f32.mrb[36].mxu0  ;;  %v2564_v54 = vpop.f32.mrb[36].mxu1  ;;  %4615 = vtanh.f32 %v4117_v61 }
 0x253   : > { %v4153_v38 = vadd.f32 %v2564_v54, %v6194_v29  ;;  %v2340_v1 = vpop.f32.mrb[37].mxu0  ;;  %v2566_v6 = vpop.f32.mrb[37].mxu1  ;;  %4617 = vpow2.f32 %v3905_v0  ;;  %v4121_v24 = vadd.f32 %v2338_v51, %v6202_v34 }
 0x254   : > { %v4154_v22 = vadd.f32 %v2566_v6, %v6198_v31  ;;  %v2342_v18 = vpop.f32.mrb[38].mxu0  ;;  %v2568_v5 = vpop.f32.mrb[38].mxu1  ;;  %4619 = vtanh.f32 %v4118_v28  ;;  %v4122_v49 = vadd.f32 %v2340_v1, %v6208_v59 }
 0x255   : > { %v3906_v7 = vmul.f32 -1.442695, %v4153_v38  ;;  %v4155_v21 = vadd.f32 %v2568_v5, %v6194_v29  ;;  %v2344_v14 = vpop.f32.mrb[39].mxu0  ;;  %v2570_v30 = vpop.f32.mrb[39].mxu1  ;;  %4621 = vtanh.f32 %v4119_v37  ;;  %v4123_v5 = vadd.f32 %v2342_v18, %v6202_v34 }
 0x256   : > { %v3907_v44 = vmul.f32 -1.442695, %v4154_v22  ;;  %v4156_v46 = vadd.f32 %v2570_v30, %v6198_v31 }
 0x257   : > { %4623 = vpow2.f32 %v3906_v7  ;;  %v3908_v26 = vmul.f32 -1.442695, %v4155_v21 }
 0x258   : > { %4625 = vpow2.f32 %v3907_v44  ;;  %v3909_v40 = vmul.f32 -1.442695, %v4156_v46 }
 0x259   : > { %v4610_v33 = vpop.eup %4609  ;;  %4627 = vtanh.f32 %v4120_v8 }
 0x25a   : > { %v4612_v13 = vpop.eup %4611  ;;  %v2761_v43 = vadd.f32 1.0, %v4610_v33  ;;  %4629 = vpow2.f32 %v3908_v26  ;;  %v2348_v48 = vpop.f32.mrb[40].mxu0 }
 0x25b   : > { %v2574_v11 = vpop.f32.mrb[40].mxu1  ;;  %v2762_v55 = vadd.f32 1.0, %v4612_v13  ;;  %4631 = vtanh.f32 %v4121_v24  ;;  %v2350_v47 = vpop.f32.mrb[41].mxu0 }
 0x25c   : > { %v4157_v41 = vadd.f32 %v2574_v11, %v6194_v29  ;;  %v2576_v42 = vpop.f32.mrb[41].mxu1  ;;  %v4614_v27 = vpop.eup %4613  ;;  %4633 = vrcp.f32 %v2761_v43 }
 0x25d   : > { %v6223_v52 = vpop.f32.mrb[42].mxu0  ;;  %v2578_v61 = vpop.f32.mrb[42].mxu1  ;;  %4635 = vrcp.f32 %v2762_v55  ;;  %v2763_v0 = vadd.f32 1.0, %v4614_v27  ;;  %v4158_v38 = vadd.f32 %v2576_v42, %v6198_v31 }
 0x25e   : > { %v4616_v60 = vpop.eup %4615  ;;  %v6225_v28 = vpop.f32.mrb[43].mxu0  ;;  %4637 = vpow2.f32 %v3909_v40  ;;  %v3910_v54 = vmul.f32 -1.442695, %v4157_v41  ;;  %v4159_v7 = vadd.f32 %v2578_v61, %v6194_v29  ;;  %v4124_v40 = vadd.f32 %v2344_v14, %v6208_v59 }
 0x25f   : > { %v2580_v37 = vpop.f32.mrb[43].mxu1  ;;  %v4618_v51 = vpop.eup %4617  ;;  %4639 = vrcp.f32 %v2763_v0  ;;  %v3911_v44 = vmul.f32 -1.442695, %v4158_v38 }
 0x260   : > { %v4620_v6 = vpop.eup %4619  ;;  %v2764_v22 = vadd.f32 1.0, %v4618_v51  ;;  %4641 = vtanh.f32 %v4122_v49  ;;  %v4160_v11 = vadd.f32 %v2580_v37, %v6198_v31  ;;  %v3912_v49 = vmul.f32 -1.442695, %v4159_v7 }
 0x261   : > { %v4622_v1 = vpop.eup %4621  ;;  %v4126_v7 = vadd.f32 %v2350_v47, %v6208_v59 }
 0x262   : > { %v4624_v8 = vpop.eup %4623  ;;  %4643 = vrcp.f32 %v2764_v22  ;;  %v6230_v46 = vpop.f32.mrb[44].mxu0 }
 0x263   : > { %v4626_v21 = vpop.eup %4625  ;;  %v2765_v30 = vadd.f32 1.0, %v4624_v8  ;;  %4645 = vpow2.f32 %v3910_v54  ;;  %v2584_v24 = vpop.f32.mrb[44].mxu1  ;;  %v4125_v54 = vadd.f32 %v2348_v48, %v6202_v34  ;;  %v4129_v17 = vadd.f32 %v6230_v46, %v6202_v34 }
 0x264   : > { %v4628_v26 = vpop.eup %4627  ;;  %v2766_v33 = vadd.f32 1.0, %v4626_v21  ;;  %4647 = vtanh.f32 %v4123_v5  ;;  %v6232_v13 = vpop.f32.mrb[45].mxu0  ;;  %v4161_v38 = vadd.f32 %v2584_v24, %v6194_v29  ;;  %v3913_v5 = vmul.f32 -1.442695, %v4160_v11 }
 0x265   : > { %v2586_v43 = vpop.f32.mrb[45].mxu1  ;;  %v4630_v18 = vpop.eup %4629  ;;  %4649 = vrcp.f32 %v2765_v30  ;;  %v4127_v11 = vadd.f32 %v6223_v52, %v6202_v34 }
 0x266   : > { %v6236_v55 = vpop.f32.mrb[46].mxu0  ;;  %v2588_v41 = vpop.f32.mrb[46].mxu1  ;;  %4651 = vrcp.f32 %v2766_v33  ;;  %v2767_v27 = vadd.f32 1.0, %v4630_v18  ;;  %v4162_v33 = vadd.f32 %v2586_v43, %v6198_v31  ;;  %v3914_v48 = vmul.f32 -1.442695, %v4161_v38 }
 0x267   : > { %v4632_v42 = vpop.eup %4631  ;;  %v6238_v61 = vpop.f32.mrb[47].mxu0  ;;  %4653 = vpow2.f32 %v3911_v44  ;;  %v4163_v47 = vadd.f32 %v2588_v41, %v6194_v29  ;;  %v4131_v25 = vadd.f32 %v6236_v55, %v6202_v34 }
 0x268   : > { %v2590_v0 = vpop.f32.mrb[47].mxu1  ;;  %v4634_v51 = vpop.eup %4633  ;;  %4655 = vrcp.f32 %v2767_v27 }
 0x269   : > { %v4636_v22 = vpop.eup %4635  ;;  %v2857_v14 = vmul.f32 %v4634_v51, %v4616_v60  ;;  %4657 = vtanh.f32 %v4124_v40  ;;  %v4164_v41 = vadd.f32 %v2590_v0, %v6198_v31 }
 0x26a   : > { %v4638_v37 = vpop.eup %4637  ;;  %v2858_v8 = vmul.f32 %v4636_v22, %v4620_v6  ;;  %4659 = vpow2.f32 %v3912_v49  ;;  %v6244_v44 = vpop.f32.mrb[48].mxu0 }
 0x26b   : > { %v4640_v21 = vpop.eup %4639  ;;  %v2768_v30 = vadd.f32 1.0, %v4638_v37  ;;  %4661 = vtanh.f32 %v4125_v54  ;;  %v2594_v24 = vpop.f32.mrb[48].mxu1 }
 0x26c   : > { %v4642_v18 = vpop.eup %4641  ;;  %v2859_v50 = vmul.f32 %v4640_v21, %v4622_v1  ;;  %v6246_v60 = vpop.f32.mrb[49].mxu0  ;;  %v3915_v1 = vmul.f32 -1.442695, %v4162_v33 }
 0x26d   : > { %v4644_v27 = vpop.eup %4643  ;;  %4663 = vrcp.f32 %v2768_v30  ;;  %v2596_v40 = vpop.f32.mrb[49].mxu1  ;;  %v4128_v30 = vadd.f32 %v6225_v28, %v6208_v59 }
 0x26e   : > { %v4646_v6 = vpop.eup %4645  ;;  %4665 = vpow2.f32 %v3913_v5  ;;  %v6251_v43 = vpop.f32.mrb[50].mxu0  ;;  %v2860_v51 = vmul.f32 %v4644_v27, %v4628_v26  ;;  %v2889_v20 = vpack.c.bf16 %v2859_v50, %v2857_v14  ;;  %v3916_v27 = vmul.f32 -1.442695, %v4163_v47 }
 0x26f   : > { %v2598_v49 = vpop.f32.mrb[50].mxu1  ;;  %v4648_v54 = vpop.eup %4647  ;;  %v2769_v38 = vadd.f32 1.0, %v4646_v6  ;;  %4667 = vtanh.f32 %v4126_v7 }
 0x270   : > { %v6253_v22 = vpop.f32.mrb[51].mxu0  ;;  %v6255_v37 = vpop.f32.mrb[51].mxu1  ;;  %4669 = vpow2.f32 %v3914_v48  ;;  %v2890_v5 = vpack.c.bf16 %v2860_v51, %v2858_v8  ;;  %v4165_v48 = vadd.f32 %v2594_v24, %v6194_v29  ;;  %v4130_v51 = vadd.f32 %v6232_v13, %v6208_v59 }
 0x271   : > { %v4650_v21 = vpop.eup %4649  ;;  %4671 = vrcp.f32 %v2769_v38 }
 0x272   : > { %v4652_v52 = vpop.eup %4651  ;;  %4673 = vtanh.f32 %v4127_v11  ;;  %v2861_v33 = vmul.f32 %v4650_v21, %v4632_v42  ;;  %3072 = vmatprep.mubr.bf16.mxu0 %v2890_v5  ;;  %v6263_v0 = vpop.f32.mrb[52].mxu0  ;;  %v3917_v42 = vmul.f32 -1.442695, %v4164_v41 }
 0x273   : > { %v4654_v26 = vpop.eup %4653  ;;  %v2862_v7 = vmul.f32 %v4652_v52, %v4642_v18  ;;  %4675 = vpow2.f32 %v3915_v1  ;;  %3073 = vmatmul.mubr.bf16.vlgmr.msra.gmra.mrb[64].mxu0 %v2889_v20  ;;  %v6265_v50 = vpop.f32.mrb[52].mxu1 }
 0x274   : > { %v4656_v6 = vpop.eup %4655  ;;  %v2770_v32 = vadd.f32 1.0, %v4654_v26  ;;  %4677 = vtanh.f32 %v4128_v30  ;;  %v6267_v18 = vpop.f32.mrb[53].mxu0  ;;  %v3918_v30 = vmul.f32 -1.442695, %v4165_v48  ;;  %v4167_v26 = vadd.f32 %v2598_v49, %v6194_v29 }
 0x275   : > { %v4658_v28 = vpop.eup %4657  ;;  %v2863_v14 = vmul.f32 %v4656_v6, %v4648_v54  ;;  %v6269_v11 = vpop.f32.mrb[53].mxu1  ;;  %v4166_v54 = vadd.f32 %v2596_v40, %v6198_v31  ;;  %v4168_v49 = vadd.f32 %v6255_v37, %v6198_v31 }
 0x276   : > { %v4660_v8 = vpop.eup %4659  ;;  %4679 = vrcp.f32 %v2770_v32  ;;  %v6273_v24 = vpop.f32.mrb[54].mxu0 }
 0x277   : > { %v4662_v46 = vpop.eup %4661  ;;  %v2771_v47 = vadd.f32 1.0, %v4660_v8  ;;  %4681 = vpow2.f32 %v3916_v27  ;;  %v6275_v20 = vpop.f32.mrb[54].mxu1  ;;  %v2891_v27 = vpack.c.bf16 %v2863_v14, %v2861_v33  ;;  %v3919_v40 = vmul.f32 -1.442695, %v4166_v54 }
 0x278   : > { %v4664_v38 = vpop.eup %4663  ;;  %4683 = vtanh.f32 %v4129_v17  ;;  %v6278_v32 = vpop.f32.mrb[55].mxu0 }
 0x279   : > { %v6280_v1 = vpop.f32.mrb[55].mxu1  ;;  %v4666_v21 = vpop.eup %4665  ;;  %4685 = vrcp.f32 %v2771_v47  ;;  %v2864_v13 = vmul.f32 %v4664_v38, %v4658_v28  ;;  %v3920_v38 = vmul.f32 -1.442695, %v4167_v26 }
 0x27a   : > { %v4668_v52 = vpop.eup %4667  ;;  %v2772_v41 = vadd.f32 1.0, %v4666_v21  ;;  %4687 = vpow2.f32 %v3917_v42  ;;  %v2388_v48 = vpop.f32.mrb[56].mxu0 }
 0x27b   : > { %v4670_v5 = vpop.eup %4669  ;;  %4689 = vtanh.f32 %v4130_v51  ;;  %v2892_v8 = vpack.c.bf16 %v2864_v13, %v2862_v7  ;;  %v2614_v47 = vpop.f32.mrb[56].mxu1  ;;  %v6290_v33 = vadd.f32 %v2388_v48, %v6202_v34  ;;  %v4132_v13 = vadd.f32 %v6238_v61, %v6208_v59 }
 0x27c   : > { %v4672_v6 = vpop.eup %4671  ;;  %4691 = vrcp.f32 %v2772_v41  ;;  %v2773_v17 = vadd.f32 1.0, %v4670_v5  ;;  %v6293_v7 = vadd.f32 %v2614_v47, %v6194_v29  ;;  %v2390_v14 = vpop.f32.mrb[57].mxu0 }
 0x27d   : > { %v4674_v57 = vpop.eup %4673  ;;  %4693 = vpow2.f32 %v3918_v30  ;;  %v6285_v21 = vmul.f32 %v4672_v6, %v4662_v46  ;;  %3080 = vmatprep.mubr.bf16.mxu0 %v2892_v8  ;;  %v2616_v42 = vpop.f32.mrb[57].mxu1  ;;  %v6296_v46 = vadd.f32 %v2390_v14, %v6208_v59  ;;  %v4169_v8 = vadd.f32 %v6265_v50, %v6194_v29 }
 0x27e   : > { %v4676_v28 = vpop.eup %4675  ;;  %4695 = vrcp.f32 %v2773_v17  ;;  %3081 = vmatmul.mubr.bf16.gmra.mrb[68].mxu0 %v2891_v27  ;;  %v6299_v54 = vadd.f32 %v2616_v42, %v6198_v31  ;;  %v2392_v37 = vpop.f32.mrb[58].mxu0 }
 0x27f   : > { %v4678_v55 = vpop.eup %4677  ;;  %v2774_v51 = vadd.f32 1.0, %v4676_v28  ;;  %v2618_v30 = vpop.f32.mrb[58].mxu1  ;;  %4697 = vpow2.f32 %v3919_v40  ;;  %v6304_v5 = vadd.f32 %v2392_v37, %v6202_v34  ;;  %v3921_v28 = vmul.f32 -1.442695, %v4168_v49 }
 0x280   : > { %v4680_v41 = vpop.eup %4679  ;;  %v6307_v6 = vadd.f32 %v2618_v30, %v6194_v29  ;;  %v2394_v26 = vpop.f32.mrb[59].mxu0  ;;  %v4133_v37 = vadd.f32 %v6244_v44, %v6202_v34  ;;  %v4135_v30 = vadd.f32 %v6251_v43, %v6202_v34  ;;  %v3922_v49 = vmul.f32 -1.442695, %v4169_v8 }
 0x281   : > { %v2620_v27 = vpop.f32.mrb[59].mxu1  ;;  %v4682_v17 = vpop.eup %4681  ;;  %4699 = vrcp.f32 %v2774_v51  ;;  %v6312_v48 = vadd.f32 %v2394_v26, %v6208_v59  ;;  %v2866_v14 = vmul.f32 %v4680_v41, %v4668_v52  ;;  %v4134_v51 = vadd.f32 %v6246_v60, %v6208_v59 }
 0x282   : > { %v6315_v47 = vadd.f32 %v2620_v27, %v6198_v31  ;;  %v4684_v61 = vpop.eup %4683  ;;  %4701 = vtanh.f32 %v4131_v25  ;;  %v2775_v40 = vadd.f32 1.0, %v4682_v17  ;;  %v4170_v26 = vadd.f32 %v6269_v11, %v6198_v31  ;;  %v2398_v41 = vpop.f32.mrb[60].mxu0 }
 0x283   : > { %v4686_v42 = vpop.eup %4685  ;;  %4703 = vpow2.f32 %v3920_v38  ;;  %v4171_v44 = vadd.f32 %v6275_v20, %v6194_v29  ;;  %v2624_v17 = vpop.f32.mrb[60].mxu1 }
 0x284   : > { %v4688_v50 = vpop.eup %4687  ;;  %4705 = vrcp.f32 %v2775_v40  ;;  %v2867_v25 = vmul.f32 %v4686_v42, %v4674_v57  ;;  %v6329_v40 = vadd.f32 %v2398_v41, %v6202_v34  ;;  %v6332_v43 = vadd.f32 %v2624_v17, %v6194_v29  ;;  %v2400_v57 = vpop.f32.mrb[61].mxu0 }
 0x285   : > { %v4690_v27 = vpop.eup %4689  ;;  %4707 = vtanh.f32 %v4132_v13  ;;  %v2776_v52 = vadd.f32 1.0, %v4688_v50  ;;  %v2626_v11 = vpop.f32.mrb[61].mxu1  ;;  %v6335_v42 = vadd.f32 %v2400_v57, %v6208_v59  ;;  %v3923_v41 = vmul.f32 -1.442695, %v4170_v26 }
 0x286   : > { %v4692_v60 = vpop.eup %4691  ;;  %4709 = vpow2.f32 %v3921_v28  ;;  %v2893_v38 = vpack.c.bf16 %v2867_v25, %v6285_v21  ;;  %v6338_v20 = vadd.f32 %v2626_v11, %v6198_v31  ;;  %v2402_v28 = vpop.f32.mrb[62].mxu0 }
 0x287   : > { %v4694_v13 = vpop.eup %4693  ;;  %4711 = vrcp.f32 %v2776_v52  ;;  %v2868_v8 = vmul.f32 %v4692_v60, %v4678_v55  ;;  %v2628_v50 = vpop.f32.mrb[62].mxu1  ;;  %v6341_v17 = vadd.f32 %v2402_v28, %v6202_v34  ;;  %v4172_v55 = vadd.f32 %v6280_v1, %v6198_v31 }
 0x288   : > { %v4696_v21 = vpop.eup %4695  ;;  %4713 = vtanh.f32 %v4133_v37  ;;  %v2777_v25 = vadd.f32 1.0, %v4694_v13  ;;  %v2404_v45 = vpop.f32.mrb[63].mxu0  ;;  %v6346_v60 = vadd.f32 %v2628_v50, %v6194_v29 }
 0x289   : > { %v2630_v58 = vpop.f32.mrb[63].mxu1  ;;  %4715 = vpow2.f32 %v3922_v49  ;;  %v2894_v52 = vpack.c.bf16 %v2868_v8, %v2866_v14  ;;  %v4698_v57 = vpop.eup %4697  ;;  %v6349_v11 = vadd.f32 %v2404_v45, %v6208_v59  ;;  %v2869_v26 = vmul.f32 %v4696_v21, %v4684_v61 }
 0x28a   : > { %4717 = vrcp.f32 %v2777_v25  ;;  %v6352_v37 = vadd.f32 %v2630_v58, %v6198_v31  ;;  %v2778_v28 = vadd.f32 1.0, %v4698_v57  ;;  %v3924_v49 = vmul.f32 -1.442695, %v4171_v44 }
 0x28b   : > { %v4700_v13 = vpop.eup %4699  ;;  %4719 = vtanh.f32 %v4134_v51  ;;  %3088 = vmatprep.mubr.bf16.mxu0 %v2894_v52  ;;  %v4136_v14 = vadd.f32 %v6253_v22, %v6208_v59  ;;  %v3925_v58 = vmul.f32 -1.442695, %v4172_v55  ;;  %v4137_v44 = vadd.f32 %v6263_v0, %v6202_v34 }
 0x28c   : > { %v4702_v23 = vpop.eup %4701  ;;  %4721 = vpow2.f32 %v3923_v41  ;;  %3089 = vmatmul.mubr.bf16.gmra.mrb[72].mxu0 %v2893_v38  ;;  %v2870_v1 = vmul.f32 %v4700_v13, %v4690_v27  ;;  %v3926_v38 = vmul.f32 -1.442695, %v6293_v7  ;;  %v4138_v41 = vadd.f32 %v6267_v18, %v6208_v59 }
 0x28d   : > { %v4704_v29 = vpop.eup %4703  ;;  %4723 = vrcp.f32 %v2778_v28  ;;  %v3927_v52 = vmul.f32 -1.442695, %v6299_v54  ;;  %v4139_v7 = vadd.f32 %v6273_v24, %v6202_v34  ;;  %v3928_v18 = vmul.f32 -1.442695, %v6307_v6 }
 0x28e   : > { %v4706_v45 = vpop.eup %4705  ;;  %4725 = vtanh.f32 %v4135_v30  ;;  %v2779_v8 = vadd.f32 1.0, %v4704_v29  ;;  %v3929_v34 = vmul.f32 -1.442695, %v6315_v47 }
 0x28f   : > { %v4708_v31 = vpop.eup %4707  ;;  %4727 = vpow2.f32 %v3924_v49  ;;  %v2871_v61 = vmul.f32 %v4706_v45, %v4702_v23 }
 0x290   : > { %v4710_v51 = vpop.eup %4709  ;;  %4729 = vrcp.f32 %v2779_v8 }
 0x291   : > { %v4712_v50 = vpop.eup %4711  ;;  %4731 = vtanh.f32 %v4136_v14  ;;  %v2780_v27 = vadd.f32 1.0, %v4710_v51  ;;  %v2895_v21 = vpack.c.bf16 %v2871_v61, %v2869_v26  ;;  %v3930_v51 = vmul.f32 -1.442695, %v6332_v43 }
 0x292   : > { %v4714_v25 = vpop.eup %4713  ;;  %4733 = vpow2.f32 %v3925_v58  ;;  %v2872_v22 = vmul.f32 %v4712_v50, %v4708_v31 }
 0x293   : > { %v4716_v30 = vpop.eup %4715  ;;  %4735 = vrcp.f32 %v2780_v27 }
 0x294   : > { %v4718_v23 = vpop.eup %4717  ;;  %4737 = vtanh.f32 %v4137_v44  ;;  %v2781_v55 = vadd.f32 1.0, %v4716_v30  ;;  %v2896_v0 = vpack.c.bf16 %v2872_v22, %v2870_v1  ;;  %v4140_v1 = vadd.f32 %v6278_v32, %v6208_v59 }
 0x295   : > { %v4720_v57 = vpop.eup %4719  ;;  %4739 = vpow2.f32 %v3926_v38  ;;  %v2873_v13 = vmul.f32 %v4718_v23, %v4714_v25  ;;  %v3931_v38 = vmul.f32 -1.442695, %v6338_v20  ;;  %v3932_v23 = vmul.f32 -1.442695, %v6346_v60 }
 0x296   : > { %v4722_v28 = vpop.eup %4721  ;;  %4741 = vrcp.f32 %v2781_v55  ;;  %3096 = vmatprep.mubr.bf16.mxu0 %v2896_v0 }
 0x297   : > { %v4724_v26 = vpop.eup %4723  ;;  %4743 = vtanh.f32 %v4138_v41  ;;  %v2782_v49 = vadd.f32 1.0, %v4722_v28  ;;  %3097 = vmatmul.mubr.bf16.gmra.mrb[76].mxu0 %v2895_v21 }
 0x298   : > { %v4726_v29 = vpop.eup %4725  ;;  %4745 = vpow2.f32 %v3927_v52  ;;  %v2874_v14 = vmul.f32 %v4724_v26, %v4720_v57  ;;  %v3933_v57 = vmul.f32 -1.442695, %v6352_v37 }
 0x299   : > { %v4728_v54 = vpop.eup %4727  ;;  %4747 = vrcp.f32 %v2782_v49 }
 0x29a   : > { %v4730_v45 = vpop.eup %4729  ;;  %4749 = vtanh.f32 %v4139_v7  ;;  %v2783_v8 = vadd.f32 1.0, %v4728_v54 }
 0x29b   : > { %v4732_v24 = vpop.eup %4731  ;;  %4751 = vpow2.f32 %v3928_v18  ;;  %v2875_v58 = vmul.f32 %v4730_v45, %v4726_v29 }
 0x29c   : > { %v4734_v31 = vpop.eup %4733  ;;  %4753 = vrcp.f32 %v2783_v8 }
 0x29d   : > { %v4736_v6 = vpop.eup %4735  ;;  %4755 = vtanh.f32 %v4140_v1  ;;  %v2784_v61 = vadd.f32 1.0, %v4734_v31  ;;  %v2897_v44 = vpack.c.bf16 %v2875_v58, %v2873_v13 }
 0x29e   : > { %v4738_v50 = vpop.eup %4737  ;;  %4757 = vpow2.f32 %v3929_v34  ;;  %v2876_v27 = vmul.f32 %v4736_v6, %v4732_v24 }
 0x29f   : > { %v4740_v59 = vpop.eup %4739  ;;  %4759 = vrcp.f32 %v2784_v61 }
 0x2a0   : > { %v4742_v32 = vpop.eup %4741  ;;  %4761 = vtanh.f32 %v6290_v33  ;;  %v2785_v47 = vadd.f32 1.0, %v4740_v59  ;;  %v2898_v21 = vpack.c.bf16 %v2876_v27, %v2874_v14 }
 0x2a1   : > { %v4744_v25 = vpop.eup %4743  ;;  %4763 = vpow2.f32 %v3930_v51  ;;  %v2877_v22 = vmul.f32 %v4742_v32, %v4738_v50 }
 0x2a2   : > { %v4746_v30 = vpop.eup %4745  ;;  %4765 = vrcp.f32 %v2785_v47  ;;  %3104 = vmatprep.mubr.bf16.mxu0 %v2898_v21 }
 0x2a3   : > { %v4748_v43 = vpop.eup %4747  ;;  %4767 = vtanh.f32 %v6296_v46  ;;  %v2786_v41 = vadd.f32 1.0, %v4746_v30  ;;  %3105 = vmatmul.mubr.bf16.gmra.mrb[80].mxu0 %v2897_v44 }
 0x2a4   : > { %v4750_v55 = vpop.eup %4749  ;;  %4769 = vpow2.f32 %v3931_v38  ;;  %v2878_v33 = vmul.f32 %v4748_v43, %v4744_v25 }
 0x2a5   : > { %v4752_v52 = vpop.eup %4751  ;;  %4771 = vrcp.f32 %v2786_v41 }
 0x2a6   : > { %v4754_v20 = vpop.eup %4753  ;;  %4773 = vtanh.f32 %v6304_v5  ;;  %v2787_v0 = vadd.f32 1.0, %v4752_v52 }
 0x2a7   : > { %v4756_v13 = vpop.eup %4755  ;;  %4775 = vpow2.f32 %v3932_v23  ;;  %v2879_v28 = vmul.f32 %v4754_v20, %v4750_v55 }
 0x2a8   : > { %v4758_v7 = vpop.eup %4757  ;;  %4777 = vrcp.f32 %v2787_v0  ;;  %v6383_v0 = vld [vmem:[%s6536_s6] ss:$0 sm:$0xff] }
 0x2a9   : > { %v4760_v46 = vpop.eup %4759  ;;  %4779 = vtanh.f32 %v6312_v48  ;;  %v2788_v60 = vadd.f32 1.0, %v4758_v7  ;;  %v2899_v26 = vpack.c.bf16 %v2879_v28, %v2877_v22 }
 0x2aa   : > { %v4762_v49 = vpop.eup %4761  ;;  %4781 = vpow2.f32 %v3933_v57  ;;  %v2880_v18 = vmul.f32 %v4760_v46, %v4756_v13 }
 0x2ab   : > { %v4764_v29 = vpop.eup %4763  ;;  %4783 = vrcp.f32 %v2788_v60 }
 0x2ac   : > { %v4766_v14 = vpop.eup %4765  ;;  %v2789_v5 = vadd.f32 1.0, %v4764_v29  ;;  %v2900_v54 = vpack.c.bf16 %v2880_v18, %v2878_v33  ;;  %4785 = vtanh.f32 %v6329_v40 }
 0x2ad   : > { %v4768_v1 = vpop.eup %4767  ;;  %v2881_v37 = vmul.f32 %v4766_v14, %v4762_v49 }
 0x2ae   : > { %v4770_v45 = vpop.eup %4769  ;;  %4787 = vrcp.f32 %v2789_v5  ;;  %3112 = vmatprep.mubr.bf16.mxu0 %v2900_v54 }
 0x2af   : > { %v4772_v8 = vpop.eup %4771  ;;  %v2790_v34 = vadd.f32 1.0, %v4770_v45  ;;  %3113 = vmatmul.mubr.bf16.gmra.mrb[84].mxu0 %v2899_v26  ;;  %4789 = vtanh.f32 %v6335_v42 }
 0x2b0   : > { %v4774_v48 = vpop.eup %4773  ;;  %v2882_v24 = vmul.f32 %v4772_v8, %v4768_v1 }
 0x2b1   : > { %v4776_v58 = vpop.eup %4775  ;;  %4791 = vrcp.f32 %v2790_v34 }
 0x2b2   : > { %v4778_v31 = vpop.eup %4777  ;;  %v2791_v6 = vadd.f32 1.0, %v4776_v58  ;;  %4793 = vtanh.f32 %v6341_v17 }
 0x2b3   : > { %v4780_v61 = vpop.eup %4779  ;;  %v2883_v51 = vmul.f32 %v4778_v31, %v4774_v48 }
 0x2b4   : > { %v4782_v40 = vpop.eup %4781  ;;  %4795 = vrcp.f32 %v2791_v6 }
 0x2b5   : > { %v4784_v44 = vpop.eup %4783  ;;  %v2792_v50 = vadd.f32 1.0, %v4782_v40  ;;  %v2901_v27 = vpack.c.bf16 %v2883_v51, %v2881_v37  ;;  %4797 = vtanh.f32 %v6349_v11 }
 0x2b6   : > { %v2884_v59 = vmul.f32 %v4784_v44, %v4780_v61  ;;  %v4786_v32 = vpop.eup %4785  ;;  %v4885_v44 = vmov -1e+30  }
 0x2b7   : > { %4799 = vrcp.f32 %v2792_v50  ;;  %463 = vst.msk [vmem:[#allocation2] sm:$0xf] %vm462_vm12, %v4885_v44 }
 0x2b8   : > { %v4788_v42 = vpop.eup %4787  ;;  %v2902_v47 = vpack.c.bf16 %v2884_v59, %v2882_v24 }
 0x2b9   : > { %v2885_v38 = vmul.f32 %v4788_v42, %v4786_v32  ;;  %v4790_v21 = vpop.eup %4789 }
 0x2ba   : > { %3120 = vmatprep.mubr.bf16.mxu0 %v2902_v47 }
 0x2bb   : > { %v4792_v25 = vpop.eup %4791  ;;  %3121 = vmatmul.mubr.bf16.gmra.mrb[88].mxu0 %v2901_v27 }
 0x2bc   : > { %v2886_v22 = vmul.f32 %v4792_v25, %v4790_v21  ;;  %v4794_v17 = vpop.eup %4793 }
 0x2be   : > { %v4796_v30 = vpop.eup %4795 }
 0x2bf   : > { %v2887_v43 = vmul.f32 %v4796_v30, %v4794_v17  ;;  %v4798_v41 = vpop.eup %4797 }
 0x2c1   : > { %v4800_v23 = vpop.eup %4799  ;;  %v2903_v55 = vpack.c.bf16 %v2887_v43, %v2885_v38 }
 0x2c2   : > { %v2888_v33 = vmul.f32 %v4800_v23, %v4798_v41 }
 0x2c4   : > { %v2904_v52 = vpack.c.bf16 %v2888_v33, %v2886_v22 }
 0x2c6   : > { %3128 = vmatprep.mubr.bf16.mxu0 %v2904_v52 }
 0x2c7   : > { %3129 = vmatmul.mubr.bf16.gmra.mrb[92].mxu0 %v2903_v55 }
 0x346   : > { %v4069_v11 = vpop.f32.mrb[64].mxu0 }
 0x347   : > { %v4070_v20 = vpop.f32.mrb[65].mxu0 }
 0x348   : > { %v4071_v57 = vadd.f32 %v4070_v20, %v4069_v11  ;;  %v4072_v13 = vpop.f32.mrb[66].mxu0 }
 0x349   : > { %v4073_v28 = vpop.f32.mrb[67].mxu0 }
 0x34a   : > { %v4074_v7 = vadd.f32 %v4073_v28, %v4072_v13  ;;  %v3075_v46 = vadd.f32 %v4071_v57, %v6383_v0 }
 0x34c   : > { %3137 = vxpose.xlu0.b32.start [1/16] (narrow) %v3075_v46, 8  ;;  %v3078_v60 = vadd.f32 %v4074_v7, %v6383_v0 }
 0x350   : > { %3138 = vxpose.xlu0.b32.cont [2/16] (narrow) %v3078_v60, 8 }
 0x351   : > { %v4075_v26 = vpop.f32.mrb[68].mxu0 }
 0x352   : > { %v4076_v49 = vpop.f32.mrb[69].mxu0 }
 0x353   : > { %v4077_v18 = vadd.f32 %v4076_v49, %v4075_v26  ;;  %v4078_v29 = vpop.f32.mrb[70].mxu0 }
 0x354   : > { %v4079_v14 = vpop.f32.mrb[71].mxu0 }
 0x355   : > { %v4080_v5 = vadd.f32 %v4079_v14, %v4078_v29  ;;  %v3083_v54 = vadd.f32 %v4077_v18, %v6383_v0 }
 0x357   : > { %3139 = vxpose.xlu0.b32.cont [3/16] (narrow) %v3083_v54, 8  ;;  %v3086_v1 = vadd.f32 %v4080_v5, %v6383_v0 }
 0x35b   : > { %3140 = vxpose.xlu0.b32.cont [4/16] (narrow) %v3086_v1, 8 }
 0x35f   : > { %v4081_v37 = vpop.f32.mrb[72].mxu0 }
 0x360   : > { %v4082_v45 = vpop.f32.mrb[73].mxu0 }
 0x361   : > { %v4083_v8 = vadd.f32 %v4082_v45, %v4081_v37  ;;  %v4084_v34 = vpop.f32.mrb[74].mxu0 }
 0x362   : > { %v4085_v48 = vpop.f32.mrb[75].mxu0 }
 0x363   : > { %v4086_v24 = vadd.f32 %v4085_v48, %v4084_v34  ;;  %v3091_v58 = vadd.f32 %v4083_v8, %v6383_v0  ;;  %v6587_v8 = vlaneseq }
 0x365   : > { %3141 = vxpose.xlu0.b32.cont [5/16] (narrow) %v3091_v58, 8  ;;  %v3094_v31 = vadd.f32 %v4086_v24, %v6383_v0  ;;  %v3171_v34 = vand.u32 127, %v6587_v8 }
 0x367   : > { %v3172_v48 = vadd.s32 %v3171_v34, %v5487_v56  ;;  %v4887_v56 = vmov 0.0  }
 0x368   : > { %464 = vst.msk [vmem:[#allocation3] sm:$0xf] %vm462_vm12, %v4887_v56 }
 0x369   : > { %3142 = vxpose.xlu0.b32.cont [6/16] (narrow) %v3094_v31, 8  ;;  %vm3173_vm13 = vcmp.lt.s32.totalorder %v3172_v48, 200  ;;  %v4886_v31 = vmov 0  }
 0x36a   : > { %v4087_v6 = vpop.f32.mrb[76].mxu0  ;;  %4303 = vset.pattern.permute.xlu1 %v4886_v31  ;;  %3250 = vmatprep.mubr.bf16.mxu1 %v4886_v31 }
 0x36b   : > { %v4088_v61 = vpop.f32.mrb[77].mxu0 }
 0x36c   : > { %v4089_v51 = vadd.f32 %v4088_v61, %v4087_v6  ;;  %v4090_v40 = vpop.f32.mrb[78].mxu0  ;;  %v3175_v6 = vld [vmem:[#allocation2] sm:$0xf] }
 0x36d   : > { %v4091_v50 = vpop.f32.mrb[79].mxu0 }
 0x36e   : > { %v4092_v27 = vadd.f32 %v4091_v50, %v4090_v40  ;;  %v3099_v59 = vadd.f32 %v4089_v51, %v6383_v0 }
 0x370   : > { %3143 = vxpose.xlu0.b32.cont [7/16] (narrow) %v3099_v59, 8  ;;  %v3102_v32 = vadd.f32 %v4092_v27, %v6383_v0 }
 0x374   : > { %3144 = vxpose.xlu0.b32.cont [8/16] (narrow) %v3102_v32, 8 }
 0x376   : > { %v4093_v42 = vpop.f32.mrb[80].mxu0 }
 0x377   : > { %v4094_v47 = vpop.f32.mrb[81].mxu0 }
 0x378   : > { %v4095_v38 = vadd.f32 %v4094_v47, %v4093_v42  ;;  %v4096_v21 = vpop.f32.mrb[82].mxu0 }
 0x379   : > { %v4097_v25 = vpop.f32.mrb[83].mxu0 }
 0x37a   : > { %v4098_v22 = vadd.f32 %v4097_v25, %v4096_v21  ;;  %v3107_v17 = vadd.f32 %v4095_v38, %v6383_v0 }
 0x37c   : > { %3145 = vxpose.xlu0.b32.cont [9/16] (narrow) %v3107_v17, 8  ;;  %v3110_v30 = vadd.f32 %v4098_v22, %v6383_v0 }
 0x380   : > { %3146 = vxpose.xlu0.b32.cont [10/16] (narrow) %v3110_v30, 8 }
 0x382   : > { %v4099_v43 = vpop.f32.mrb[84].mxu0 }
 0x383   : > { %v4100_v41 = vpop.f32.mrb[85].mxu0 }
 0x384   : > { %v4101_v23 = vadd.f32 %v4100_v41, %v4099_v43  ;;  %v4102_v55 = vpop.f32.mrb[86].mxu0 }
 0x385   : > { %v4103_v33 = vpop.f32.mrb[87].mxu0 }
 0x386   : > { %v4104_v52 = vadd.f32 %v4103_v33, %v4102_v55  ;;  %v3115_v11 = vadd.f32 %v4101_v23, %v6383_v0 }
 0x388   : > { %3147 = vxpose.xlu0.b32.cont [11/16] (narrow) %v3115_v11, 8  ;;  %v3118_v20 = vadd.f32 %v4104_v52, %v6383_v0 }
 0x38c   : > { %3148 = vxpose.xlu0.b32.cont [12/16] (narrow) %v3118_v20, 8 }
 0x38e   : > { %v4105_v57 = vpop.f32.mrb[88].mxu0 }
 0x38f   : > { %v4106_v13 = vpop.f32.mrb[89].mxu0 }
 0x390   : > { %v4107_v28 = vadd.f32 %v4106_v13, %v4105_v57  ;;  %v4108_v7 = vpop.f32.mrb[90].mxu0 }
 0x391   : > { %v4109_v46 = vpop.f32.mrb[91].mxu0 }
 0x392   : > { %v4110_v60 = vadd.f32 %v4109_v46, %v4108_v7  ;;  %v3123_v26 = vadd.f32 %v4107_v28, %v6383_v0 }
 0x394   : > { %3149 = vxpose.xlu0.b32.cont [13/16] (narrow) %v3123_v26, 8  ;;  %v3126_v49 = vadd.f32 %v4110_v60, %v6383_v0 }
 0x398   : > { %3150 = vxpose.xlu0.b32.cont [14/16] (narrow) %v3126_v49, 8 }
 0x39a   : > { %v4111_v18 = vpop.f32.mrb[92].mxu0 }
 0x39b   : > { %v4112_v29 = vpop.f32.mrb[93].mxu0 }
 0x39c   : > { %v4113_v14 = vadd.f32 %v4112_v29, %v4111_v18  ;;  %v4114_v5 = vpop.f32.mrb[94].mxu0 }
 0x39d   : > { %v4115_v54 = vpop.f32.mrb[95].mxu0 }
 0x39e   : > { %v4116_v1 = vadd.f32 %v4115_v54, %v4114_v5  ;;  %v3131_v37 = vadd.f32 %v4113_v14, %v6383_v0 }
 0x3a0   : > { %3151 = vxpose.xlu0.b32.cont [15/16] (narrow) %v3131_v37, 8  ;;  %v3134_v45 = vadd.f32 %v4116_v1, %v6383_v0 }
 0x3a4   : > { %3152 = vxpose.xlu0.b32.end [16/16] (narrow) %v3134_v45, 8 }
 0x3cd   : > { %4304 = vset.pattern.permute.xlu0 %v4886_v31 }
 0x3e8   : > { %v3153_v24 = vpop.trf.xlu0 }
 0x3e9   : > { %3169 = vst [vmem:[%s400_s24] sm:$0xf] %v3153_v24  ;;  %v3174_v58 = vsel %vm3173_vm13, %v3153_v24, -inf }
 0x3ea   : > { %v3177_v0 = vsel %vm3176_vm15, %v3174_v58, -inf }
 0x3eb   : > { %3178 = vmax.xlane.f32.xlu1 %v3177_v0 }
 0x478   : > { %v3179_v61 = vpop.xlane.xlu1 %3178 }
 0x479   : > { %v3180_v51 = vmax.f32 %v3175_v6, %v3179_v61 }
 0x47b   : > { %v3181_v40 = vsub.f32 %v3175_v6, %v3180_v51  ;;  %3314 = vst.msk [vmem:[#allocation2] sm:$0xf] %vm462_vm12, %v3180_v51  ;;  %3186 = vperm.xlu1 %4303, %v3180_v51  }
 0x47d   : > { %v3182_v38 = vmul.f32 1.442695, %v3181_v40 }
 0x482   : > { %v3318_v44 = vld [vmem:[#allocation2] sm:$0xf] }
 0x483   : > { %3319 = vst.msk [vmem:[%s447_s30] sm:$0xf] %vm462_vm12, %v3318_v44  ;;  %s4888_s30 = smov [#allocation5]  }
 0x484   : > { %s4809_s22 = sshll.u32 %s4888_s30, 4  ;;  %s4810_s22 = int_to_ptr.vmem [resolvable:$false] %s4809_s22 }
 0x485   : > { %s4811_s24 = scalar_lea.vmem %s4810_s22, 128  ;;  %p4812_p2 = scmp.lt.s32.totalorder %s6471_s11, %s4810_s22 }
 0x486   : > { %p4813_p3 = scmp.lt.s32.totalorder %s4811_s24, %s4805_s15 }
 0x488   : > { %p4814_p5 = por %p4813_p3, %p4812_p2 }
 0x48a   : > { %p4815_p6 = pnand %p4814_p5, %p4808_p1 }
 0x4fa   : > { %v3187_v50 = vpop.permute.xlu1 %3186 }
 0x4fb   : > { %v3189_v27 = vsub.f32 %v3174_v58, %v3187_v50 }
 0x4fd   : > { %v3190_v59 = vmul.f32 1.442695, %v3189_v27 }
 0x4ff   : > { %4801 = vpow2.f32 %v3190_v59 }
 0x500   : > { %4803 = vpow2.f32 %v3182_v38 }
 0x509   : > { %v4802_v32 = vpop.eup %4801 }
 0x50a   : > { %v3194_v42 = vsel %vm3176_vm15, %v4802_v32, 0.0  ;;  %v3217_v47 = vpack.c.bf16 %v4802_v32, %v4802_v32  ;;  %v4804_v12 = vpop.eup %4803 }
 0x50b   : > { %3195 = vadd.xlane.f32.xlu1 %v3194_v42 }
 0x50c   : > { %3251 = vmatmul.mubr.bf16.vlgmr.msra.gmra.mrb[64].mxu1 %v3217_v47 }
 0x50d   : > { %4004 = vmatpush1.bf16.msk.msra.mxu1 %vm5510_vm2, %v5681_v2  ;;  %3291 = vmatprep.mubr.bf16.mxu1 %v4886_v31  ;;  %v6590_v2 = vld [vmem:[#allocation17_spill] sm:$0xff] }
 0x50e   : > { %4007 = vmatprep.subr.msk.bf16.mxu1 %vm5562_vm5, %v5745_v3  ;;  %v6593_v3 = vld [vmem:[#allocation19_spill] sm:$0xff] }
 0x511   : > { %4010 = vmatpush1.bf16.msk.msra.mxu1 %vm5562_vm5, %v5743_v62  ;;  %v6592_v62 = vld [vmem:[#allocation16_spill] sm:$0xff] }
 0x512   : > { %4013 = vmatprep.subr.msk.bf16.mxu1 %vm5627_vm8, %v5807_v19 }
 0x515   : > { %4016 = vmatpush1.bf16.msk.msra.mxu1 %vm5627_vm8, %v5805_v4  ;;  %v6595_v4 = vld [vmem:[#allocation18_spill] sm:$0xff] }
 0x516   : > { %4019 = vmatprep.subr.msk.bf16.mxu1 %vm5689_vm11, %v5869_v36 }
 0x519   : > { %4022 = vmatpush1.bf16.msk.msra.mxu1 %vm5689_vm11, %v5867_v16 }
 0x51a   : > { %4025 = vmatprep.subr.msk.bf16.mxu1 %vm5751_vm14, %v5929_v15 }
 0x51c   : > { %3204 = vperm.xlu1 %4303, %v4804_v12  }
 0x51d   : > { %4028 = vmatpush1.bf16.msk.msra.mxu1 %vm5751_vm14, %v5927_v35 }
 0x51e   : > { %4031 = vmatprep.subr.msk.bf16.mxu1 %vm5813_vm1, %v5985_v63 }
 0x521   : > { %4034 = vmatpush1.bf16.msk.msra.mxu1 %vm5813_vm1, %v6589_v53 }
 0x522   : > { %4037 = vmatprep.subr.msk.bf16.mxu1 %vm5875_vm6, %v6590_v2 }
 0x525   : > { %4040 = vmatpush1.bf16.msk.msra.mxu1 %vm5875_vm6, %v6592_v62 }
 0x526   : > { %4043 = vmatprep.subr.msk.bf16.mxu1 %vm5934_vm10, %v6593_v3 }
 0x529   : > { %4046 = vmatpush1.bf16.msk.msra.mxu1 %vm5934_vm10, %v6595_v4 }
 0x52c   : > { %3292 = vmatmul.mubr.bf16.vlgmr.msra.gmra.mrb[68].mxu1 %v3217_v47 }
 0x52d   : > { %4818 = shalt.err (!%p4815_p6)
}
 0x52e   : > { %s4819_s16 = scalar_lea.hbm %s3352_s17, 64  ;;  %s4823_s21 = scalar_lea.hbm %s6537_s7, 128 }
 0x52f   : > { %p4820_p7 = scmp.ne.s32.totalorder %s3352_s17, %s4819_s16  ;;  %p4824_p11 = scmp.lt.u32.totalorder %s3352_s17, %s6537_s7 }
 0x530   : > { %p4825_p12 = scmp.lt.u32.totalorder %s4823_s21, %s4819_s16  ;;  %p4827_p0 = scmp.lt.u32.totalorder %s4819_s16, %s3352_s17 }
 0x531   : > { %p4821_p9 = pnand %p4820_p7, %p4984_p4 }
 0x532   : > { %p4826_p13 = por %p4825_p12, %p4824_p11 }
 0x533   : > { %p4822_p10 = pneg %p4821_p9 }
 0x534   : > { %p4828_p2 = por %p4827_p0, %p4826_p13 }
 0x536   : > { %p4829_p1 = pnand %p4828_p2, %p4822_p10 }
 0x538   : > { %4832 = shalt.err (!%p4829_p1)
}
 0x539   : > { %4245 = dma.vmem_to_hbm [thread:$0]  (%p4984_p4), %s6471_s11, 64, %s3352_s17, %s3327_s29   ;;  %v3192_v19 = vld [vmem:[#allocation3] sm:$0xf]  ;;  %v3209_v63 = vcombine.high %v4887_v56, %v4887_v56 }
 0x53a   : > { %v3193_v16 = vmul.f32 %v4804_v12, %v3192_v19  ;;  %s6596_s27 = sshll.u32 %s5010_s19, 2  ;;  %s456_s11 = scalar_lea.vmem %s6540_s10, %s5019_s28 }
 0x53b   : > { %s451_s22 = scalar_lea.vmem %s6539_s9, %s6596_s27 }
 0x598   : > { %v3196_v36 = vpop.xlane.xlu1 %3195 }
 0x599   : > { %v3197_v35 = vadd.f32 %v3196_v36, %v3193_v16 }
 0x59b   : > { %3199 = vst.msk [vmem:[#allocation3] sm:$0xf] %vm462_vm12, %v3197_v35 }
 0x59c   : > { %v3205_v21 = vpop.permute.xlu1 %3204 }
 0x59d   : > { %v3213_v25 = vmul.f32 0.0, %v3205_v21  ;;  %v3214_v22 = vmul.f32 %v3209_v63, %v3205_v21 }
 0x5a2   : > { %v3320_v15 = vld [vmem:[#allocation3] sm:$0xf] }
 0x5a3   : > { %3321 = vst.msk [vmem:[%s451_s22] sm:$0xf] %vm462_vm12, %v3320_v15 }
 0x5df   : > { %v3252_v17 = vpop.f32.mrb[64].mxu1 }
 0x5e0   : > { %v3300_v30 = vadd.f32 %v3252_v17, %v3213_v25  ;;  %v3254_v43 = vpop.f32.mrb[65].mxu1 }
 0x5e1   : > { %v3301_v41 = vadd.f32 %v3254_v43, %v3214_v22  ;;  %v3256_v23 = vpop.f32.mrb[66].mxu1 }
 0x5e2   : > { %v3257_v55 = vpop.f32.mrb[67].mxu1 }
 0x5e3   : > { %v3308_v33 = vcombine.low %v3300_v30, %v3301_v41 }
 0x5e5   : > { %3324 = vst [vmem:[%s456_s11] sm:$0xff] %v3308_v33 }
 0x5ff   : > { %v3293_v52 = vpop.f32.mrb[68].mxu1 }
 0x600   : > { %v3302_v11 = vadd.f32 %v3293_v52, %v3213_v25  ;;  %v3295_v20 = vpop.f32.mrb[69].mxu1 }
 0x601   : > { %v3303_v57 = vadd.f32 %v3295_v20, %v3214_v22  ;;  %v3297_v13 = vpop.f32.mrb[70].mxu1 }
 0x602   : > { %v3298_v28 = vpop.f32.mrb[71].mxu1 }
 0x603   : > { %v3309_v7 = vcombine.low %v3302_v11, %v3303_v57 }
 0x605   : > { %3325 = vst [vmem:[%s456_s11 + $0x8] sm:$0xff] %v3309_v7 }
 0x606 PF: > { %p4251_p4 = scmp.ge.s32.totalorder %s4883_s18, 2  ;;  %s3375_s17 = sand.u32 1, %s4863_s13  }
 0x607   : > { %s3376_s28 = scalar_lea.sflag [#allocation6], %s3375_s17 }
 0x608   : > { %p4248_p3 = pnand %p4251_p4, %p4991_p8 }
 0x60a   : > { %4858 = dma.done.wait (!%p4248_p3), %s3376_s28, 64  }
 0x60b   : > { %4860 = vsyncadd (!%p4248_p3), %s3376_s28, 4294967232  ;;  %s24_s18 = sadd.s32 1, %s4883_s18   ;;  %s6597_s29 = sld [smem:[#allocation8_spill]] }
 0x60c   : > { %p21_p5 = scmp.ge.s32.totalorder %s24_s18, 4   ;;  %s6598_s15 = sld [smem:[#allocation11_spill]] }
 0x60d   : > { %s6599_s16 = sld [smem:[#allocation9_spill]]  ;;  %s6600_s17 = sld [smem:[#allocation10_spill]] }
 0x60e   : > { %s6601_s13 = smov %s4867_s14  ;;  %23 = sbr.rel (!%p21_p5) target bundleno = 4 (0x4), region = 127 }
 0x611   : > { %s6602_s14 = smov %s6597_s29 }
 0x615   :  { %3403 = vsyncpa [#allocation6], 1 }
 0x616   :  { %3405 = vsyncpa [#allocation6 + $0x1], 1 }

</bundles_post_ra>
